<compile_context>
chip_gen: v7x
topology: tpu7x:2x2x1
jax: 0.10.0
libtpu: 0.0.40
codegen_flags: <defaults>
</compile_context>

<pallas_src>
import functools

import jax
import jax.numpy as jnp
from jax import lax
from jax.experimental import pallas as pl
from jax.experimental.pallas import tpu as pltpu


_TARGET_LANES = 4096                    # ~512-4096 lanes reaches ~85% HBM roofline
_TILE_VMEM_BUDGET = 12 * 1024 * 1024    # per-step working-set target (bytes)


def _conv_kernel(x_ref, w_ref, o_ref, *, k, stride, th, w_out, cin):
    """One (batch, row-tile) grid step.

    x_ref: (1, 1, stride^2*Cin, rows_fetch, Wp)  windowed, phase-split input
    w_ref: (k, Cout, k*Cin)                      per-kh weight slabs (resident)
    o_ref: (1, Cout, th*W_out)                   lane-dense NCHW-flat output
    """
    xt = x_ref[0, 0]                             # (stride^2*Cin, rows_fetch, Wp)
    acc = None
    for kh in range(k):
        qh, ph = divmod(kh, stride)
        taps = []
        for kw in range(k):
            qw, pw = divmod(kw, stride)
            p = ph * stride + pw                 # phase-plane index
            taps.append(lax.slice(
                xt,
                (p * cin, qh, qw),
                (p * cin + cin, qh + th, qw + w_out)))   # (Cin, th, w_out)
        # Per-kh patch only: (k*Cin, th*w_out) — k x smaller than full im2col.
        patch = jnp.concatenate(taps, axis=0).reshape(k * cin, th * w_out)
        part = jnp.dot(w_ref[kh], patch, preferred_element_type=jnp.float32)
        acc = part if acc is None else acc + part
    o_ref[0] = acc.astype(o_ref.dtype)


def _step_vmem_bytes(th, *, w_out, cin, cout, k, stride, in_itemsize,
                     out_itemsize):
    """Rough per-grid-step VMEM working set for tile height `th`."""
    qmax = (k - 1) // stride
    lanes = th * w_out
    rows_fetch = th + qmax
    wp = w_out + qmax
    in_blk = stride * stride * cin * rows_fetch * wp * in_itemsize * 2  # 2x buf
    out_blk = cout * lanes * out_itemsize * 2                           # 2x buf
    w_blk = k * cout * k * cin * in_itemsize * 2
    patch = k * cin * lanes * in_itemsize                               # 1 kh live
    acc = cout * lanes * 4                                              # f32 acc
    return in_blk + out_blk + w_blk + patch + acc


def _pick_row_tile(h_out, w_out, **bytes_kw):
    """Largest divisor of h_out whose flattened tile is lane-aligned (128) and
    whose per-step working set fits the VMEM budget; targets <= 4096 lanes."""
    best = None
    for d in range(1, h_out + 1):
        if h_out % d:
            continue
        lanes = d * w_out
        if lanes % 128 or lanes > _TARGET_LANES:
            continue
        if _step_vmem_bytes(d, w_out=w_out, **bytes_kw) > _TILE_VMEM_BUDGET:
            continue
        best = d
    if best is not None:
        return best
    # Fallback: no lane-aligned divisor — take the largest divisor that still
    # fits the budget (correct, but masked partial stores: perf cliff).
    best = 1
    for d in range(1, h_out + 1):
        if h_out % d:
            continue
        if _step_vmem_bytes(d, w_out=w_out, **bytes_kw) <= _TILE_VMEM_BUDGET:
            best = d
    return best


def conv2d_c(x_nchw, weight_oihw, *, stride=1, compute_dtype=jnp.bfloat16,
             out_dtype=None, row_tile=None):
    """Equivalent of ESPNet C(nIn, nOut, kSize, stride).forward(x).

    x_nchw:        (N, Cin, H, W)
    weight_oihw:   (Cout, Cin, k, k)   (bias-free)
    compute_dtype: dtype of the MXU operands (f32 accumulation is always kept).
                   Default bf16 (recommended on v5e/v6e/v7x); None => input
                   dtype (exact f32 path).
    out_dtype:     output dtype; None => input dtype. Use bf16 when the
                   consumer is bf16 to halve output writeback.
    returns:       (N, Cout, H_out, W_out)
    """
    n, cin, h, w = x_nchw.shape
    cout, cin_w, kh_, kw_ = weight_oihw.shape
    assert cin == cin_w and kh_ == kw_, "weight must be (Cout, Cin, k, k)"
    k = kh_
    s = int(stride)
    pad = (k - 1) // 2

    h_out = (h + 2 * pad - k) // s + 1
    w_out = (w + 2 * pad - k) // s + 1

    cdtype = jnp.dtype(compute_dtype) if compute_dtype is not None \
        else jnp.dtype(x_nchw.dtype)
    odtype = jnp.dtype(out_dtype) if out_dtype is not None \
        else jnp.dtype(x_nchw.dtype)

    bytes_kw = dict(cin=cin, cout=cout, k=k, stride=s,
                    in_itemsize=cdtype.itemsize, out_itemsize=odtype.itemsize)
    if row_tile is None:
        th = _pick_row_tile(h_out, w_out, **bytes_kw)
    else:
        th = int(row_tile)
        if h_out % th:
            raise ValueError(f"row_tile={th} must divide H_out={h_out}")
    n_tiles = h_out // th

    qmax = (k - 1) // s               # halo rows/cols in phase-plane coords
    rows_fetch = th + qmax
    hp = h_out + qmax
    wp = w_out + qmax

    # ---- Layout plumbing in plain JAX (one fused XLA pass) -----------------
    xc = x_nchw.astype(cdtype)
    # Conv padding plus alignment padding so every phase plane is exactly
    # (hp, wp). For s == 1 this is exactly the usual conv padding.
    pad_r_hi = pad + (s * hp - (h + 2 * pad))
    pad_c_hi = pad + (s * wp - (w + 2 * pad))
    x_ext = jnp.pad(xc, ((0, 0), (0, 0), (pad, pad_r_hi), (pad, pad_c_hi)))
    # stride^2 phase planes: plane (ph, pw) holds x_pad[ph::s, pw::s], so every
    # in-kernel tap becomes a contiguous (unstrided) slice.
    x_ph = x_ext.reshape(n, cin, hp, s, wp, s)
    x_ph = jnp.transpose(x_ph, (0, 3, 5, 1, 2, 4)).reshape(
        n, s * s * cin, hp, wp)
    # Halo-tile the input: per-row-tile windows (tile rows + halo) so each grid
    # step DMAs only its own small block instead of the whole padded image.
    if n_tiles == 1:
        x_win = x_ph[:, None]                              # (n, 1, s^2*Cin, hp, wp)
    else:
        x_win = jnp.stack(
            [lax.slice_in_dim(x_ph, t * th, t * th + rows_fetch, axis=2)
             for t in range(n_tiles)], axis=1)     # (n, n_tiles, s^2*Cin, rf, wp)

    # Per-kh weight slabs; K ordered as (kw, ci) to match the tap concat order.
    w_slab = jnp.transpose(weight_oihw, (2, 0, 3, 1)).reshape(k, cout, k * cin)
    w_slab = w_slab.astype(cdtype)

    kernel = functools.partial(_conv_kernel, k=k, stride=s, th=th,
                               w_out=w_out, cin=cin)

    need = _step_vmem_bytes(th, w_out=w_out, **bytes_kw)
    vmem_limit = int(min(max(need * 3 // 2 + (2 << 20), 32 << 20), 64 << 20))

    flops = 2 * n * cout * cin * k * k * h_out * w_out
    bytes_accessed = (x_win.size * cdtype.itemsize
                      + w_slab.size * cdtype.itemsize
                      + n * cout * h_out * w_out * odtype.itemsize)

    out_flat = pl.pallas_call(
        kernel,
        out_shape=jax.ShapeDtypeStruct((n, cout, h_out * w_out), odtype),
        grid_spec=pltpu.PrefetchScalarGridSpec(
            num_scalar_prefetch=0,
            grid=(n, n_tiles),
            in_specs=[
                # Only this tile's (rows + halo) window is DMA'd per step.
                pl.BlockSpec((1, 1, s * s * cin, rows_fetch, wp),
                             lambda b, t: (b, t, 0, 0, 0)),
                # Small per-kh weight slabs, resident across the grid.
                pl.BlockSpec((k, cout, k * cin), lambda b, t: (0, 0, 0)),
            ],
            out_specs=pl.BlockSpec((1, cout, th * w_out),
                                   lambda b, t: (b, 0, t)),
        ),
        compiler_params=pltpu.CompilerParams(
            dimension_semantics=("parallel", "parallel"),
            vmem_limit_bytes=vmem_limit),
        cost_estimate=pl.CostEstimate(flops=flops, transcendentals=0,
                                      bytes_accessed=bytes_accessed),
    )(x_win, w_slab)

    # Kernel already produces NCHW-flat rows; this reshape is free.
    return out_flat.reshape(n, cout, h_out, w_out)


def _reference_conv(x_nchw, weight_oihw, stride, pad):
    # Pure-JAX reference (XLA conv) for correctness checking.
    return lax.conv_general_dilated(
        x_nchw, weight_oihw,
        window_strides=(stride, stride),
        padding=((pad, pad), (pad, pad)),
        dimension_numbers=("NCHW", "OIHW", "NCHW"),
    )


if __name__ == "__main__":
    # Module config: C(nIn=4, nOut=8, kSize=3, stride in {1, 2})
    nIn, nOut, kSize = 4, 8, 3
    pad = (kSize - 1) // 2

    key = jax.random.PRNGKey(0)
    kx, kw = jax.random.split(key)
    x = jax.random.normal(kx, (2, nIn, 16, 16), dtype=jnp.float32)
    weight = jax.random.normal(kw, (nOut, nIn, kSize, kSize),
                               dtype=jnp.float32) * 0.1

    # 1) Exact f32 path, stride 1, auto tile (tight tolerance).
    ref1 = _reference_conv(x, weight, 1, pad)
    out_f32 = jax.block_until_ready(
        conv2d_c(x, weight, stride=1, compute_dtype=None))
    assert out_f32.shape == ref1.shape, (out_f32.shape, ref1.shape)
    assert jnp.allclose(out_f32, ref1, atol=1e-4, rtol=1e-4), \
        float(jnp.max(jnp.abs(out_f32 - ref1)))

    # 2) Default bf16 compute (f32 accumulation), explicit 2 row tiles to
    #    exercise the halo windows; looser tolerance.
    out_bf16 = jax.block_until_ready(conv2d_c(x, weight, stride=1, row_tile=8))
    assert out_bf16.shape == ref1.shape
    assert jnp.allclose(out_bf16, ref1, atol=3e-2, rtol=3e-2), \
        float(jnp.max(jnp.abs(out_bf16 - ref1)))

    # 3) Stride-2 downsampling conv (phase-decimated path), exact f32.
    ref2 = _reference_conv(x, weight, 2, pad)
    out_s2 = jax.block_until_ready(
        conv2d_c(x, weight, stride=2, compute_dtype=None))
    assert out_s2.shape == ref2.shape, (out_s2.shape, ref2.shape)
    assert jnp.allclose(out_s2, ref2, atol=1e-4, rtol=1e-4), \
        float(jnp.max(jnp.abs(out_s2 - ref2)))

    print("KERNEL_OK")
</pallas_src>

<mosaic_0001>
module attributes {stable_mosaic.version = 11 : i64} {
  func.func @_conv_kernel(%arg0: i32, %arg1: i32, %arg2: memref<1x1x4x18x18xf32, #tpu.memory_space<vmem>>, %arg3: memref<3x8x12xf32, #tpu.memory_space<vmem>>, %arg4: memref<1x8x256xf32, #tpu.memory_space<vmem>>) attributes {dimension_semantics = [#tpu.dimension_semantics<parallel>, #tpu.dimension_semantics<parallel>], iteration_bounds = array<i64: 2, 1>, scalar_prefetch = 0 : i64, scratch_operands = 0 : i64, tpu.core_type = #tpu.core_type<tc>, window_params = [{transform_indices = @transform_0, window_bounds = array<i64: 1, 1, 4, 18, 18>}, {pipeline_mode = #tpu.pipeline_mode<synchronous>, transform_indices = @transform_1, window_bounds = array<i64: 3, 8, 12>}, {transform_indices = @transform_2, window_bounds = array<i64: 1, 8, 256>}]} {
    %c0 = arith.constant 0 : index
    %c0_0 = arith.constant 0 : index
    %c0_1 = arith.constant 0 : index
    %c0_2 = arith.constant 0 : index
    %c0_3 = arith.constant 0 : index
    %0 = vector.load %arg2[%c0, %c0_0, %c0_1, %c0_2, %c0_3] : memref<1x1x4x18x18xf32, #tpu.memory_space<vmem>>, vector<1x1x4x18x18xf32>
    %1 = vector.shape_cast %0 : vector<1x1x4x18x18xf32> to vector<4x18x18xf32>
    %2 = vector.extract_strided_slice %1 {offsets = [0, 0, 0], sizes = [4, 16, 16], strides = [1, 1, 1]} : vector<4x18x18xf32> to vector<4x16x16xf32>
    %3 = vector.extract_strided_slice %1 {offsets = [0, 0, 1], sizes = [4, 16, 16], strides = [1, 1, 1]} : vector<4x18x18xf32> to vector<4x16x16xf32>
    %4 = vector.extract_strided_slice %1 {offsets = [0, 0, 2], sizes = [4, 16, 16], strides = [1, 1, 1]} : vector<4x18x18xf32> to vector<4x16x16xf32>
    %5 = tpu.concatenate %2, %3, %4 in 0 : vector<4x16x16xf32>, vector<4x16x16xf32>, vector<4x16x16xf32> -> vector<12x16x16xf32>
    %6 = vector.shape_cast %5 : vector<12x16x16xf32> to vector<12x256xf32>
    %c0_4 = arith.constant 0 : index
    %c0_5 = arith.constant 0 : index
    %c0_6 = arith.constant 0 : index
    %7 = vector.load %arg3[%c0_4, %c0_5, %c0_6] : memref<3x8x12xf32, #tpu.memory_space<vmem>>, vector<1x8x12xf32>
    %8 = vector.shape_cast %7 : vector<1x8x12xf32> to vector<8x12xf32>
    %cst = arith.constant dense<0.000000e+00> : vector<8x256xf32>
    %9 = tpu.matmul %8, %6, %cst {dimension_numbers = #tpu.dot_dimension_numbers<[1], [0], [0], [1], [0, 0, 1, 1], [], []>} : vector<8x12xf32>, vector<12x256xf32>, vector<8x256xf32> -> vector<8x256xf32>
    %10 = vector.extract_strided_slice %1 {offsets = [0, 1, 0], sizes = [4, 16, 16], strides = [1, 1, 1]} : vector<4x18x18xf32> to vector<4x16x16xf32>
    %11 = vector.extract_strided_slice %1 {offsets = [0, 1, 1], sizes = [4, 16, 16], strides = [1, 1, 1]} : vector<4x18x18xf32> to vector<4x16x16xf32>
    %12 = vector.extract_strided_slice %1 {offsets = [0, 1, 2], sizes = [4, 16, 16], strides = [1, 1, 1]} : vector<4x18x18xf32> to vector<4x16x16xf32>
    %13 = tpu.concatenate %10, %11, %12 in 0 : vector<4x16x16xf32>, vector<4x16x16xf32>, vector<4x16x16xf32> -> vector<12x16x16xf32>
    %14 = vector.shape_cast %13 : vector<12x16x16xf32> to vector<12x256xf32>
    %c1 = arith.constant 1 : index
    %c0_7 = arith.constant 0 : index
    %c0_8 = arith.constant 0 : index
    %15 = vector.load %arg3[%c1, %c0_7, %c0_8] : memref<3x8x12xf32, #tpu.memory_space<vmem>>, vector<1x8x12xf32>
    %16 = vector.shape_cast %15 : vector<1x8x12xf32> to vector<8x12xf32>
    %cst_9 = arith.constant dense<0.000000e+00> : vector<8x256xf32>
    %17 = tpu.matmul %16, %14, %cst_9 {dimension_numbers = #tpu.dot_dimension_numbers<[1], [0], [0], [1], [0, 0, 1, 1], [], []>} : vector<8x12xf32>, vector<12x256xf32>, vector<8x256xf32> -> vector<8x256xf32>
    %18 = arith.addf %9, %17 : vector<8x256xf32>
    %19 = vector.extract_strided_slice %1 {offsets = [0, 2, 0], sizes = [4, 16, 16], strides = [1, 1, 1]} : vector<4x18x18xf32> to vector<4x16x16xf32>
    %20 = vector.extract_strided_slice %1 {offsets = [0, 2, 1], sizes = [4, 16, 16], strides = [1, 1, 1]} : vector<4x18x18xf32> to vector<4x16x16xf32>
    %21 = vector.extract_strided_slice %1 {offsets = [0, 2, 2], sizes = [4, 16, 16], strides = [1, 1, 1]} : vector<4x18x18xf32> to vector<4x16x16xf32>
    %22 = tpu.concatenate %19, %20, %21 in 0 : vector<4x16x16xf32>, vector<4x16x16xf32>, vector<4x16x16xf32> -> vector<12x16x16xf32>
    %23 = vector.shape_cast %22 : vector<12x16x16xf32> to vector<12x256xf32>
    %c2 = arith.constant 2 : index
    %c0_10 = arith.constant 0 : index
    %c0_11 = arith.constant 0 : index
    %24 = vector.load %arg3[%c2, %c0_10, %c0_11] : memref<3x8x12xf32, #tpu.memory_space<vmem>>, vector<1x8x12xf32>
    %25 = vector.shape_cast %24 : vector<1x8x12xf32> to vector<8x12xf32>
    %cst_12 = arith.constant dense<0.000000e+00> : vector<8x256xf32>
    %26 = tpu.matmul %25, %23, %cst_12 {dimension_numbers = #tpu.dot_dimension_numbers<[1], [0], [0], [1], [0, 0, 1, 1], [], []>} : vector<8x12xf32>, vector<12x256xf32>, vector<8x256xf32> -> vector<8x256xf32>
    %27 = arith.addf %18, %26 : vector<8x256xf32>
    %c0_13 = arith.constant 0 : index
    %c0_14 = arith.constant 0 : index
    %c0_15 = arith.constant 0 : index
    %28 = vector.load %arg4[%c0_13, %c0_14, %c0_15] : memref<1x8x256xf32, #tpu.memory_space<vmem>>, vector<1x8x256xf32>
    %29 = vector.shape_cast %28 : vector<1x8x256xf32> to vector<8x256xf32>
    %30 = vector.shape_cast %27 : vector<8x256xf32> to vector<1x8x256xf32>
    tpu.vector_store %arg4[%c0_13, %c0_14, %c0_15], %30 {strides = array<i32>} : memref<1x8x256xf32, #tpu.memory_space<vmem>>, vector<1x8x256xf32>,
    return
  }
  func.func @transform_0(%arg0: i32, %arg1: i32) -> (i32, i32, i32, i32, i32) {
    %c0_i32 = arith.constant 0 : i32
    %c0_i32_0 = arith.constant 0 : i32
    %c0_i32_1 = arith.constant 0 : i32
    %c0_i32_2 = arith.constant 0 : i32
    return %arg0, %arg1, %c0_i32, %c0_i32_0, %c0_i32_1 : i32, i32, i32, i32, i32
  }
  func.func @transform_1(%arg0: i32, %arg1: i32) -> (i32, i32, i32) {
    %c0_i32 = arith.constant 0 : i32
    %c0_i32_0 = arith.constant 0 : i32
    %c0_i32_1 = arith.constant 0 : i32
    %c0_i32_2 = arith.constant 0 : i32
    return %c0_i32, %c0_i32_0, %c0_i32_1 : i32, i32, i32
  }
  func.func @transform_2(%arg0: i32, %arg1: i32) -> (i32, i32, i32) {
    %c0_i32 = arith.constant 0 : i32
    %c0_i32_0 = arith.constant 0 : i32
    return %arg0, %c0_i32, %arg1 : i32, i32, i32
  }
}

</mosaic_0001>

<bundles_post_ra>
// kernel: tpu_custom_call.1
= control target key start
LH: loop header
LB: loop body
LE: loop exit
PB: predicated region body
PF: predicated region fallthrough
CT: control target
= control target key end

     0   :  { %7 = vsyncpa [#allocation3], 0  ;;  %s4349_s0 = inlined_call_operand.vmem [shape: f32[2,1,4,18,18], index: 0, kind: input, shape index: {}]   ;;  %s4350_s1 = inlined_call_operand.vmem [shape: f32[3,8,12], index: 1, kind: input, shape index: {}]   ;;  %s4351_s2 = inlined_call_operand.hbm [shape: f32[2,8,256], index: 2, kind: output, shape index: {}]  }
   0x1   :  { %9 = vsyncpa [#allocation3 + $0x1], 0  ;;  %s2869_s9 = smov 0   ;;  %s2871_s10 = smov 0  }
   0x2   :  { %s2873_s11 = smov 0   ;;  %s2875_s12 = smov 0  }
   0x3   :  { %s2877_s13 = smov 0   ;;  %s2879_s14 = smov 0  }
   0x4 LB: > { %s2427_s15 = sadd.s32 4294967295, %s2838_s14   ;;  %s2428_s16 = sadd.s32 4294967294, %s2838_s14   ;;  %s2838_s14 = sphi %s2879_s14, %s15_s14   ;;  %s2834_s13 = sphi %s2877_s13, %s4590_s13   ;;  %s2830_s12 = sphi %s2875_s12, %s4589_s12   ;;  %s2826_s11 = sphi %s2873_s11, %s4588_s11   ;;  %s2822_s10 = sphi %s2871_s10, %s4587_s10   ;;  %s2818_s9 = sphi %s2869_s9, %s4586_s9  }
   0x5   : > { %s27_s17 = sadd.s32 1, %s2834_s13  ;;  %s85_s18 = sadd.s32 1, %s2826_s11 }
   0x6   : > { %p29_p0 = scmp.ge.s32.totalorder %s27_s17, 2  ;;  %p95_p1 = scmp.ne.s32.totalorder %s2826_s11, %s2822_s10 }
   0x7   : > { %p96_p2 = scmp.eq.s32.totalorder %s2427_s15, 1  ;;  %p101_p3 = scmp.ne.s32.totalorder %s2822_s10, %s2818_s9 }
   0x8   : > { %s4592_s17 = smov (%p29_p0, %s27_s17), 0  ;;  %p102_p5 = scmp.eq.s32.totalorder %s2428_s16, 1 }
   0x9   : > { %p2909_p4 = por %p96_p2, %p95_p1  ;;  %s80_s20 = ssub.s32 %s2834_s13, %s4592_s17 }
   0xa   : > { %p2431_p6 = scmp.ge.s32.totalorder %s2838_s14, 1  ;;  %p83_p7 = scmp.eq.s32.totalorder %s80_s20, 0 }
   0xb   : > { %p2916_p8 = por %p102_p5, %p101_p3  ;;  %p135_p9 = scmp.lt.s32.totalorder %s2838_s14, 3 }
   0xc   : > { %s2922_s22 = scalar_select %p83_p7, %s2826_s11, %s85_s18  }
   0xd   : > { %p136_p10 = pnand %p2431_p6, %p135_p9 }
   0xf   : > { %139 = sbr.rel (%p136_p10) target bundleno = 635 (0x27b), region = 28 }
  0x16   : > { %p161_p11 = scmp.lt.s32.totalorder %s2830_s12, 1  ;;  %v2840_v0 = vmov 1983009808   ;;  %v244_v2 = vlaneseq  ;;  %s2841_s28 = smov 127   ;;  %vm815_vm0 = vcmask 1046528   ;;  %vm1612_vm1 = vcmask 1045504  }
  0x17   : > { %v242_v1 = vunpack.c.l.s4 %v2840_v0  ;;  %s2842_s29 = smov 126   ;;  %v4352_v47 = vmov 0.0   ;;  %s2845_s30 = smov 16   ;;  %vm759_vm2 = vcmask 130048   ;;  %vm762_vm3 = vcmask 261120  }
  0x18   : > { %s162_s23 = scalar_select %p161_p11, %s2830_s12, 1  ;;  %v2931_v4 = vshrl.u32 %v244_v2, 7  ;;  %1605 = vmatprep.mubr.f32.mxu0 %v4352_v47  ;;  %1525 = vmatprep.mubr.f32.mxu1 %v4352_v47  ;;  %vm765_vm4 = vcmask 392192   ;;  %vm768_vm5 = vcmask 523264   ;;  %vm771_vm6 = vcmask 654336  }
  0x19   : > { %v243_v3 = vunpack.c.0.s8 %v242_v1  ;;  %s2846_s3 = smov 32   ;;  %s2847_s4 = smov 48   ;;  %vm774_vm7 = vcmask 785408   ;;  %vm777_vm8 = vcmask 916480   ;;  %vm1454_vm9 = vcmask 1043456  }
  0x1a   : > { %s2473_s24 = smul.u32 96, %s162_s23  ;;  %s2848_s5 = smov 64   ;;  %vm2852_vm10 = vmmov 1   ;;  %vm1450_vm12 = vcmask 97280  }
  0x1b   : > { %v2957_v13 = vsub.s32 %v243_v3, %v2931_v4  ;;  %s2849_s6 = smov 80   ;;  %s2850_s7 = smov 96   ;;  %vm4165_vm11 = vmpackc.low %vm1454_vm9, %vm2852_vm10 }
  0x1c   : > { %s2929_s27 = scalar_lea.vmem %s4349_s0, %s2473_s24  ;;  %s2851_s8 = smov 112  }
  0x1d   : > { %v2934_v5 = vld [vmem:[%s2929_s27 + $0x38] sm:$0xff]  ;;  %v2937_v6 = vld [vmem:[%s2929_s27 + $0x8] sm:$0xff]  ;;  %v2944_v7 = vld [vmem:[%s2929_s27 + $0x50] sm:$0xff]  ;;  %s158_s25 = sand.u32 1, %s2822_s10  }
  0x1e   : > { %201 = vrot.lane.b32.xlu1 %v2934_v5, %s2841_s28  ;;  %193 = vrot.lane.b32.xlu0 %v2937_v6, %s2841_s28  ;;  %v2947_v8 = vld [vmem:[%s2929_s27 + $0x20] sm:$0xff]  ;;  %v443_v9 = vcombine.low %v2937_v6, %v2934_v5  ;;  %v2952_v10 = vld [vmem:[%s2929_s27 + $0x28] sm:$0x3]  ;;  %v817_v11 = vrot.slane %v2937_v6, 1  ;;  %v1614_v12 = vrot.slane %v2937_v6, 2  ;;  %v832_v17 = vrot.slane %v2944_v7, 1 }
  0x1f   : > { %v822_v14 = vrot.slane %v2947_v8, 1  ;;  %v824_v15 = vrot.slane %v2952_v10, 1  ;;  %v2962_v16 = vld [vmem:[%s2929_s27 + $0x10] sm:$0x3]  ;;  %v1629_v18 = vrot.slane %v2944_v7, 2  ;;  %v1619_v19 = vrot.slane %v2947_v8, 2 }
  0x20   : > { %v1621_v20 = vrot.slane %v2952_v10, 2  ;;  %v819_v21 = vrot.slane %v2962_v16, 1  ;;  %v1616_v22 = vrot.slane %v2962_v16, 2  ;;  %v2975_v23 = vld [vmem:[%s2929_s27 + $0x58] sm:$0x3]  ;;  %v827_v28 = vrot.slane %v2934_v5, 1 }
  0x21   : > { %v2980_v24 = vsel %vm815_vm0, %v822_v14, %v824_v15  ;;  %v834_v25 = vrot.slane %v2975_v23, 1  ;;  %v1631_v26 = vrot.slane %v2975_v23, 2  ;;  %v179_v27 = vld [vmem:[%s2929_s27 + $0x40] sm:$0x3]  ;;  %v1624_v35 = vrot.slane %v2934_v5, 2  ;;  %v174_v52 = vld [vmem:[%s2929_s27 + $0x18] sm:$0xff] }
  0x22   : > { %205 = vrot.lane.b32.xlu1 %v2944_v7, %s2841_s28  ;;  %197 = vrot.lane.b32.xlu0 %v2947_v8, %s2841_s28  ;;  %v2989_v29 = vsel %vm1612_vm1, %v1619_v19, %v1621_v20  ;;  %v2994_v30 = vsel %vm815_vm0, %v817_v11, %v819_v21  ;;  %v2999_v31 = vsel %vm1612_vm1, %v1614_v12, %v1616_v22  ;;  %v829_v32 = vrot.slane %v179_v27, 1  ;;  %v171_v53 = vld [vmem:[%s2929_s27] sm:$0xff]  ;;  %v180_v60 = vld [vmem:[%s2929_s27 + $0x48] sm:$0xff]  ;;  %s2432_s26 = sshll.u32 %s158_s25, 4 }
  0x23   : > { %v3004_v33 = vsel %vm815_vm0, %v832_v17, %v834_v25  ;;  %v3009_v34 = vsel %vm1612_vm1, %v1629_v18, %v1631_v26  ;;  %v1626_v36 = vrot.slane %v179_v27, 2  ;;  %v3044_v48 = vrot.slane %v443_v9, %v2957_v13  ;;  %v177_v61 = vld [vmem:[%s2929_s27 + $0x30] sm:$0xff]  ;;  %s2450_s27 = sshll.u32 %s2830_s12, 8 }
  0x24   : > { %v1120_v37 = vcombine.low %v2980_v24, %v3004_v33  ;;  %v1121_v38 = vcombine.high %v2980_v24, %v3004_v33  ;;  %v1917_v39 = vcombine.low %v2989_v29, %v3009_v34  ;;  %v1918_v40 = vcombine.high %v2989_v29, %v3009_v34 }
  0x25   : > { %v3027_v41 = vsel %vm815_vm0, %v827_v28, %v829_v32  ;;  %v3032_v42 = vsel %vm1612_vm1, %v1624_v35, %v1626_v36  ;;  %v459_v49 = vcombine.low %v2947_v8, %v2944_v7  ;;  %v444_v50 = vcombine.high %v2937_v6, %v2934_v5 }
  0x26   : > { %221 = vrot.lane.b32.xlu1 %v2947_v8, %s2842_s29  ;;  %217 = vrot.lane.b32.xlu0 %v2937_v6, %s2842_s29  ;;  %v1104_v43 = vcombine.low %v2994_v30, %v3027_v41  ;;  %v1105_v44 = vcombine.high %v2994_v30, %v3027_v41  ;;  %v1901_v45 = vcombine.low %v2999_v31, %v3032_v42  ;;  %v821_v15 = vrot.slane %v174_v52, 1 }
  0x27   : > { %v1902_v46 = vcombine.high %v2999_v31, %v3032_v42  ;;  %v460_v51 = vcombine.high %v2947_v8, %v2944_v7  ;;  %v3060_v54 = vrot.slane %v459_v49, %v2957_v13  ;;  %v3063_v55 = vrot.slane %v444_v50, %v2957_v13 }
  0x28   : > { %v239_v63 = vcombine.low %v171_v53, %v177_v61  ;;  %v255_v0 = vcombine.low %v174_v52, %v180_v60  ;;  %v816_v20 = vrot.slane %v171_v53, 1  ;;  %v1618_v21 = vrot.slane %v174_v52, 2 }
  0x29   : > { %v3066_v56 = vrot.slane %v460_v51, %v2957_v13  ;;  %v507_v57 = vcombine.low %v3044_v48, %v3060_v54  ;;  %v508_v58 = vcombine.high %v3044_v48, %v3060_v54  ;;  %v1613_v22 = vrot.slane %v171_v53, 2 }
  0x2a   : > { %229 = vrot.lane.b32.xlu1 %v2944_v7, %s2842_s29  ;;  %225 = vrot.lane.b32.xlu0 %v2934_v5, %s2842_s29  ;;  %v3091_v1 = vrot.slane %v239_v63, %v2957_v13  ;;  %v3094_v2 = vrot.slane %v255_v0, %v2957_v13  ;;  %v831_v25 = vrot.slane %v180_v60, 1  ;;  %v826_v26 = vrot.slane %v177_v61, 1 }
  0x2b   : > { %v523_v59 = vcombine.low %v3063_v55, %v3066_v56  ;;  %v524_v62 = vcombine.high %v3063_v55, %v3066_v56  ;;  %v240_v32 = vcombine.high %v171_v53, %v177_v61  ;;  %v256_v36 = vcombine.high %v174_v52, %v180_v60 }
  0x2c   : > { %v303_v3 = vcombine.low %v3091_v1, %v3094_v2  ;;  %v304_v9 = vcombine.high %v3091_v1, %v3094_v2  ;;  %v1623_v49 = vrot.slane %v177_v61, 2  ;;  %v823_v50 = vsel %vm815_vm0, %v821_v15, %v822_v14 }
  0x2d   : > { %v828_v51 = vsel %vm815_vm0, %v826_v26, %v827_v28  ;;  %v3240_v30 = vrot.slane %v1918_v40, %v2957_v13  ;;  %v2844_v41 = vmov 1934713408  }
  0x2e   : > { %195 = vrot.lane.b32.xlu1 %v174_v52, %s2841_s28  ;;  %191 = vrot.lane.b32.xlu0 %v171_v53, %s2841_s28 }
  0x2f   : > { %4434 = vst [vmem:[#allocation20_spill] sm:$0xff] %v3240_v30 }
  0x32   : > { %203 = vrot.lane.b32.xlu1 %v180_v60, %s2841_s28  ;;  %199 = vrot.lane.b32.xlu0 %v177_v61, %s2841_s28 }
  0x36   : > { %219 = vrot.lane.b32.xlu1 %v174_v52, %s2842_s29  ;;  %215 = vrot.lane.b32.xlu0 %v171_v53, %s2842_s29  ;;  %v833_v52 = vsel %vm815_vm0, %v831_v25, %v832_v17  ;;  %v1615_v53 = vsel %vm1612_vm1, %v1613_v22, %v1614_v12  ;;  %v1625_v17 = vsel %vm1612_vm1, %v1623_v49, %v1624_v35 }
  0x37   : > { %v916_v28 = vcombine.low %v823_v50, %v833_v52  ;;  %v917_v15 = vcombine.high %v823_v50, %v833_v52  ;;  %v3164_v35 = vrot.slane %v1104_v43, %v2957_v13  ;;  %v3194_v49 = vrot.slane %v1917_v39, %v2957_v13 }
  0x39   : > { %v3148_v12 = vrot.slane %v916_v28, %v2957_v13  ;;  %4423 = vst [vmem:[#allocation9_spill] sm:$0xff] %v3164_v35  ;;  %v3182_v43 = vrot.slane %v917_v15, %v2957_v13  ;;  %4428 = vst [vmem:[#allocation14_spill] sm:$0xff] %v3194_v49  ;;  %v3220_v28 = vrot.slane %v1105_v44, %v2957_v13  ;;  %v306_v44 = vunpack.c.l.s4 %v2844_v41 }
  0x3a   : > { %227 = vrot.lane.b32.xlu1 %v180_v60, %s2842_s29  ;;  %223 = vrot.lane.b32.xlu0 %v177_v61, %s2842_s29 }
  0x3b   : > { %4420 = vst [vmem:[#allocation6_spill] sm:$0xff] %v3148_v12  ;;  %4426 = vst [vmem:[#allocation12_spill] sm:$0xff] %v3182_v43  ;;  %v307_v34 = vunpack.c.0.s8 %v306_v44 }
  0x3c   : > { %4431 = vst [vmem:[#allocation17_spill] sm:$0xff] %v3220_v28  ;;  %v4444_v28 = vmov 0.0  }
  0x3e   : > { %801 = vrot.lane.b32.xlu1 %v2952_v10, %s2841_s28  ;;  %799 = vrot.lane.b32.xlu0 %v2962_v16, %s2841_s28 }
  0x42   : > { %805 = vrot.lane.b32.xlu1 %v2975_v23, %s2841_s28  ;;  %803 = vrot.lane.b32.xlu0 %v179_v27, %s2841_s28  ;;  %s160_s28 = scalar_lea.vmem [#allocation2], %s2432_s26 }
  0x46   : > { %809 = vrot.lane.b32.xlu1 %v2952_v10, %s2842_s29  ;;  %807 = vrot.lane.b32.xlu0 %v2962_v16, %s2842_s29  ;;  %v1628_v10 = vrot.slane %v180_v60, 2  ;;  %v3111_v16 = vrot.slane %v240_v32, %v2957_v13 }
  0x48   : > { %v1630_v6 = vsel %vm1612_vm1, %v1628_v10, %v1629_v18 }
  0x4a   : > { %813 = vrot.lane.b32.xlu1 %v2975_v23, %s2842_s29  ;;  %811 = vrot.lane.b32.xlu0 %v179_v27, %s2842_s29  ;;  %v3114_v23 = vrot.slane %v256_v36, %v2957_v13  ;;  %v818_v27 = vsel %vm815_vm0, %v816_v20, %v817_v11  ;;  %v1620_v11 = vsel %vm1612_vm1, %v1618_v21, %v1619_v19  ;;  %s2348_s29 = sshll.u32 %s160_s28, 4  ;;  %s4304_s29 = int_to_ptr.vmem [resolvable:$true] %s2348_s29 }
  0x4b   : > { %v900_v61 = vcombine.low %v818_v27, %v828_v51  ;;  %v1697_v19 = vcombine.low %v1615_v53, %v1625_v17  ;;  %v1713_v63 = vcombine.low %v1620_v11, %v1630_v6  ;;  %v901_v0 = vcombine.high %v818_v27, %v828_v51  ;;  %s2760_s12 = scalar_lea.vmem %s4304_s29, 256 }
  0x4c   : > { %v319_v60 = vcombine.low %v3111_v16, %v3114_v23  ;;  %v320_v14 = vcombine.high %v3111_v16, %v3114_v23  ;;  %v3170_v21 = vrot.slane %v1120_v37, %v2957_v13  ;;  %v1698_v36 = vcombine.high %v1615_v53, %v1625_v17  ;;  %p2761_p12 = scmp.ne.s32.totalorder %s4304_s29, %s2760_s12 }
  0x4d   : > { %v3145_v8 = vrot.slane %v900_v61, %v2957_v13  ;;  %v3155_v7 = vrot.slane %v1697_v19, %v2957_v13  ;;  %v3158_v18 = vrot.slane %v1713_v63, %v2957_v13  ;;  %v3179_v32 = vrot.slane %v901_v0, %v2957_v13 }
  0x4e   : > { %4424 = vst [vmem:[#allocation10_spill] sm:$0xff] %v3170_v21  ;;  %v1168_v26 = vcombine.low %v3164_v35, %v3170_v21  ;;  %v1714_v10 = vcombine.high %v1620_v11, %v1630_v6  ;;  %v3188_v37 = vrot.slane %v1901_v45, %v2957_v13  ;;  %v3197_v27 = vrot.slane %v1698_v36, %v2957_v13  ;;  %p2762_p13 = pnand %p2761_p12, %p2909_p4 }
  0x4f   : > { %4419 = vst [vmem:[#allocation5_spill] sm:$0xff] %v3145_v8  ;;  %v964_v20 = vcombine.low %v3145_v8, %v3148_v12  ;;  %4421 = vst [vmem:[#allocation7_spill] sm:$0xff] %v3155_v7  ;;  %v1761_v22 = vcombine.low %v3155_v7, %v3158_v18  ;;  %v3226_v17 = vrot.slane %v1121_v38, %v2957_v13 }
  0x50   : > { %4422 = vst [vmem:[#allocation8_spill] sm:$0xff] %v3158_v18  ;;  %4425 = vst [vmem:[#allocation11_spill] sm:$0xff] %v3179_v32  ;;  %v3200_v50 = vrot.slane %v1714_v10, %v2957_v13  ;;  %v1965_v51 = vcombine.low %v3188_v37, %v3194_v49  ;;  %v3234_v19 = vrot.slane %v1902_v46, %v2957_v13  ;;  %p2763_p0 = pneg %p2762_p13 }
  0x51   : > { %4427 = vst [vmem:[#allocation13_spill] sm:$0xff] %v3188_v37  ;;  %4429 = vst [vmem:[#allocation15_spill] sm:$0xff] %v3197_v27  ;;  %v3263_v36 = vsub.s32 %v307_v34, %v2931_v4 }
  0x52   : > { %4430 = vst [vmem:[#allocation16_spill] sm:$0xff] %v3200_v50  ;;  %4432 = vst [vmem:[#allocation18_spill] sm:$0xff] %v3226_v17 }
  0x53   : > { %4433 = vst [vmem:[#allocation19_spill] sm:$0xff] %v3234_v19  ;;  %v3275_v33 = vrot.slane %v507_v57, %v3263_v36  ;;  %v3294_v57 = vrot.slane %v508_v58, %v3263_v36  ;;  %v3306_v24 = vrot.slane %v524_v62, %v3263_v36  ;;  %v3315_v48 = vrot.slane %v303_v3, %v3263_v36 }
  0x54   : > { %v3321_v54 = vrot.slane %v304_v9, %v3263_v36  ;;  %v3331_v58 = vrot.slane %v319_v60, %v3263_v36  ;;  %v3343_v62 = vrot.slane %v964_v20, %v3263_v36  ;;  %v3346_v1 = vrot.slane %v1761_v22, %v3263_v36 }
  0x55   : > { %4435 = vst [vmem:[#allocation21_spill] sm:$0xff] %v3275_v33  ;;  %4437 = vst [vmem:[#allocation23_spill] sm:$0xff] %v3315_v48  ;;  %v3360_v20 = vrot.slane %v1965_v51, %v3263_v36 }
  0x56   : > { %4439 = vst [vmem:[#allocation25_spill] sm:$0xff] %v3343_v62  ;;  %4440 = vst [vmem:[#allocation26_spill] sm:$0xff] %v3346_v1 }
  0x57   : > { %4442 = vst [vmem:[#allocation28_spill] sm:$0xff] %v3360_v20 }
  0x90   : > { %v3248_v31 = vpop.permute.xlu1 %201  ;;  %v3250_v42 = vpop.permute.xlu0 %193 }
  0x91   : > { %v475_v29 = vcombine.low %v3250_v42, %v3248_v31  ;;  %v476_v34 = vcombine.high %v3250_v42, %v3248_v31 }
  0x93   : > { %v483_v0 = vrot.slane %v475_v29, %v2957_v13  ;;  %v490_v2 = vrot.slane %v476_v34, %v2957_v13 }
  0x94   : > { %v3254_v40 = vpop.permute.xlu1 %205  ;;  %v3256_v46 = vpop.permute.xlu0 %197 }
  0x95   : > { %v491_v63 = vcombine.low %v3256_v46, %v3254_v40  ;;  %v492_v44 = vcombine.high %v3256_v46, %v3254_v40  ;;  %v4445_v49 = vrot.slane %v3256_v46, 1  ;;  %v4446_v21 = vrot.slane %v3256_v46, 2 }
  0x97   : > { %v499_v15 = vrot.slane %v491_v63, %v2957_v13  ;;  %v506_v6 = vrot.slane %v492_v44, %v2957_v13 }
  0x98   : > { %v3265_v10 = vpop.permute.xlu1 %221  ;;  %v3267_v41 = vpop.permute.xlu0 %217 }
  0x99   : > { %v539_v38 = vcombine.low %v483_v0, %v499_v15  ;;  %v540_v3 = vcombine.high %v483_v0, %v499_v15  ;;  %v556_v15 = vcombine.high %v490_v2, %v506_v6  ;;  %v4454_v43 = vrot.slane %v3265_v10, 1 }
  0x9b   : > { %v3278_v29 = vrot.slane %v539_v38, %v3263_v36  ;;  %v3300_v38 = vrot.slane %v523_v59, %v3263_v36  ;;  %v3337_v59 = vrot.slane %v320_v14, %v3263_v36  ;;  %v3357_v14 = vrot.slane %v1168_v26, %v3263_v36 }
  0x9c   : > { %v3280_v63 = vpop.permute.xlu1 %229  ;;  %v3282_v4 = vpop.permute.xlu0 %225  ;;  %v3373_v25 = vrot.slane %v540_v3, %v3263_v36  ;;  %v3385_v44 = vrot.slane %v556_v15, %v3263_v36 }
  0x9d   : > { %4436 = vst [vmem:[#allocation22_spill] sm:$0xff] %v3278_v29  ;;  %v595_v61 = vcombine.low %v3265_v10, %v3280_v63  ;;  %v579_v39 = vcombine.low %v3267_v41, %v3282_v4  ;;  %4438 = vst [vmem:[#allocation24_spill] sm:$0xff] %v3337_v59  ;;  %v596_v53 = vcombine.high %v3265_v10, %v3280_v63  ;;  %v4455_v20 = vrot.slane %v3280_v63, 1 }
  0x9e   : > { %4441 = vst [vmem:[#allocation27_spill] sm:$0xff] %v3357_v14  ;;  %v580_v45 = vcombine.high %v3267_v41, %v3282_v4  ;;  %v572_v23 = vcombine.high %v3275_v33, %v3278_v29 }
  0x9f   : > { %v603_v9 = vrot.slane %v595_v61, %v2957_v13  ;;  %v587_v60 = vrot.slane %v579_v39, %v2957_v13  ;;  %v555_v61 = vcombine.low %v490_v2, %v506_v6  ;;  %v3388_v3 = vrot.slane %v596_v53, %v2957_v13 }
  0xa0   : > { %v3323_v55 = vpop.permute.xlu1 %195  ;;  %v3325_v56 = vpop.permute.xlu0 %191  ;;  %v573_v53 = vcombine.low %v3294_v57, %v3373_v25 }
  0xa1   : > { %v611_v52 = vcombine.low %v587_v60, %v603_v9  ;;  %v3382_v16 = vrot.slane %v555_v61, %v3263_v36  ;;  %v3399_v61 = vrot.slane %v580_v45, %v2957_v13  ;;  %v841_v2 = vrot.slane %v3323_v55, 1 }
  0xa2   : > { %v1638_v22 = vrot.slane %v3323_v55, 2  ;;  %v612_v51 = vcombine.high %v587_v60, %v603_v9  ;;  %v836_v34 = vrot.slane %v3325_v56, 1 }
  0xa3   : > { %v3402_v15 = vrot.slane %v611_v52, %v3263_v36  ;;  %v1633_v52 = vrot.slane %v3325_v56, 2  ;;  %v627_v27 = vcombine.low %v3399_v61, %v3388_v3  ;;  %v3429_v37 = vsel %vm815_vm0, %v841_v2, %v4445_v49 }
  0xa4   : > { %v204_v26 = vpop.permute.xlu1 %203  ;;  %v200_v11 = vpop.permute.xlu0 %199  ;;  %v3434_v35 = vsel %vm1612_vm1, %v1638_v22, %v4446_v21  ;;  %v4450_v49 = vrot.slane %v3248_v31, 1  ;;  %v4451_v21 = vrot.slane %v3248_v31, 2 }
  0xa5   : > { %4443 = vst [vmem:[#allocation29_spill] sm:$0xff] %v3402_v15  ;;  %v851_v39 = vrot.slane %v204_v26, 1  ;;  %v1648_v47 = vrot.slane %v204_v26, 2  ;;  %v846_v45 = vrot.slane %v200_v11, 1  ;;  %v1643_v29 = vrot.slane %v200_v11, 2 }
  0xa6   : > { %v287_v33 = vcombine.low %v3323_v55, %v204_v26  ;;  %v271_v30 = vcombine.low %v3325_v56, %v200_v11  ;;  %v288_v9 = vcombine.high %v3323_v55, %v204_v26  ;;  %v272_v60 = vcombine.high %v3325_v56, %v200_v11 }
  0xa7   : > { %v643_v50 = vcombine.high %v3402_v15, %v4444_v28  ;;  %v4447_v55 = vrot.slane %v3254_v40, 1  ;;  %v626_v56 = vrot.slane %v612_v51, %v3263_v36  ;;  %v4448_v26 = vrot.slane %v3254_v40, 2 }
  0xa8   : > { %v3392_v5 = vpop.permute.xlu1 %219  ;;  %v3394_v0 = vpop.permute.xlu0 %215  ;;  %v3450_v2 = vsel %vm815_vm0, %v846_v45, %v4450_v49  ;;  %v3455_v22 = vsel %vm1612_vm1, %v1643_v29, %v4451_v21  ;;  %v3471_v45 = vrot.slane %v271_v30, %v2957_v13 }
  0xa9   : > { %v3439_v11 = vsel %vm815_vm0, %v851_v39, %v4447_v55  ;;  %v3445_v17 = vsel %vm1612_vm1, %v1648_v47, %v4448_v26  ;;  %v2542_v15 = vpack.i.bf16 %v643_v50, %v572_v23  ;;  %v4452_v39 = vrot.slane %v3250_v42, 1 }
  0xaa   : > { %4449 = vst [vmem:[#allocation30_spill] sm:$0xff] %v3445_v17  ;;  %v4453_v55 = vrot.slane %v3250_v42, 2  ;;  %v3468_v26 = vrot.slane %v287_v33, %v2957_v13  ;;  %v3478_v50 = vrot.slane %v288_v9, %v2957_v13  ;;  %v3481_v23 = vrot.slane %v272_v60, %v2957_v13 }
  0xab   : > { %v3460_v51 = vsel %vm815_vm0, %v836_v34, %v4452_v39  ;;  %2543 = vrot.lane.b32.xlu0 %v2542_v15, %s2845_s30  ;;  %v635_v34 = vrot.slane %v627_v27, %v3263_v36  ;;  %v861_v21 = vrot.slane %v3392_v5, 1  ;;  %v2552_v39 = vpack.i.bf16 %v626_v56, %v573_v53 }
  0xac   : > { %v3414_v19 = vpop.permute.xlu1 %227  ;;  %v3416_v6 = vpop.permute.xlu0 %223  ;;  %v3465_v47 = vsel %vm1612_vm1, %v1633_v52, %v4453_v55  ;;  %v335_v55 = vcombine.low %v3471_v45, %v3468_v26  ;;  %v1658_v32 = vrot.slane %v3392_v5, 2  ;;  %v856_v18 = vrot.slane %v3394_v0, 1 }
  0xad   : > { %v391_v27 = vcombine.low %v3392_v5, %v3414_v19  ;;  %v375_v15 = vcombine.low %v3394_v0, %v3416_v6  ;;  %v871_v30 = vrot.slane %v3414_v19, 1  ;;  %v1668_v9 = vrot.slane %v3414_v19, 2 }
  0xae   : > { %v1653_v52 = vrot.slane %v3394_v0, 2  ;;  %v866_v7 = vrot.slane %v3416_v6, 1  ;;  %v1663_v12 = vrot.slane %v3416_v6, 2  ;;  %v644_v8 = vcombine.high %v626_v56, %v4444_v28 }
  0xaf   : > { %2553 = vrot.lane.b32.xlu0 %v2552_v39, %s2846_s3  ;;  %v3524_v59 = vsel %vm815_vm0, %v861_v21, %v4454_v43  ;;  %v392_v53 = vcombine.high %v3392_v5, %v3414_v19  ;;  %v3529_v1 = vrot.slane %v391_v27, %v2957_v13  ;;  %v3532_v39 = vrot.slane %v375_v15, %v2957_v13 }
  0xb0   : > { %v3473_v49 = vpop.permute.xlu1 %801  ;;  %v3475_v29 = vpop.permute.xlu0 %799  ;;  %v3537_v62 = vsel %vm815_vm0, %v871_v30, %v4455_v20  ;;  %v4456_v56 = vrot.slane %v3280_v63, 2  ;;  %v376_v43 = vcombine.high %v3394_v0, %v3416_v6  ;;  %v4458_v5 = vcombine.high %v3294_v57, %v3373_v25 }
  0xb1   : > { %v4459_v27 = vrot.slane %v3265_v10, 2  ;;  %v4461_v20 = vrot.slane %v3267_v41, 1  ;;  %v4464_v57 = vrot.slane %v3282_v4, 1 }
  0xb2   : > { %v3542_v17 = vsel %vm1612_vm1, %v1668_v9, %v4456_v56  ;;  %v2562_v19 = vpack.i.bf16 %v644_v8, %v4458_v5  ;;  %v844_v9 = vrot.slane %v3473_v49, 1  ;;  %v4462_v8 = vrot.slane %v3267_v41, 2 }
  0xb3   : > { %4457 = vst [vmem:[#allocation31_spill] sm:$0xff] %v3542_v17  ;;  %v3554_v15 = vsel %vm1612_vm1, %v1658_v32, %v4459_v27  ;;  %v3559_v30 = vsel %vm815_vm0, %v856_v18, %v4461_v20  ;;  %v3573_v32 = vsel %vm815_vm0, %v866_v7, %v4464_v57  ;;  %v4465_v56 = vrot.slane %v3282_v4, 2 }
  0xb4   : > { %v3506_v60 = vpop.permute.xlu1 %805  ;;  %v3508_v33 = vpop.permute.xlu0 %803  ;;  %4460 = vst [vmem:[#allocation32_spill] sm:$0xff] %v3554_v15  ;;  %v3568_v25 = vsel %vm1612_vm1, %v1653_v52, %v4462_v8  ;;  %v1641_v5 = vrot.slane %v3473_v49, 2  ;;  %2563 = vrot.lane.b32.xlu0 %v2562_v19, %s2847_s4  ;;  %v3583_v27 = vrot.slane %v392_v53, %v2957_v13  ;;  %v407_v20 = vcombine.low %v3532_v39, %v3529_v1 }
  0xb5   : > { %v854_v0 = vrot.slane %v3506_v60, 1  ;;  %4463 = vst [vmem:[#allocation33_spill] sm:$0xff] %v3568_v25  ;;  %v3578_v18 = vsel %vm1612_vm1, %v1663_v12, %v4465_v56  ;;  %v3592_v12 = vrot.slane %v376_v43, %v2957_v13  ;;  %v839_v49 = vrot.slane %v3475_v29, 1 }
  0xb6   : > { %4466 = vst [vmem:[#allocation34_spill] sm:$0xff] %v3578_v18  ;;  %v849_v8 = vrot.slane %v3508_v33, 1  ;;  %v4467_v53 = vcombine.low %v3300_v38, %v3382_v16  ;;  %v4468_v7 = vrot.slane %v3256_v46, 1  ;;  %v4470_v43 = vrot.slane %v3254_v40, 1 }
  0xb7   : > { %v4472_v15 = vrot.slane %v3256_v46, 2  ;;  %v1636_v57 = vrot.slane %v3475_v29, 2  ;;  %v645_v56 = vcombine.high %v635_v34, %v4444_v28  ;;  %v1651_v18 = vrot.slane %v3506_v60, 2 }
  0xb8   : > { %v3549_v21 = vpop.permute.xlu1 %809  ;;  %v3563_v6 = vpop.permute.xlu0 %807  ;;  %v2572_v19 = vpack.i.bf16 %v635_v34, %v4467_v53  ;;  %v3606_v52 = vsel %vm815_vm0, %v4468_v7, %v844_v9  ;;  %v3611_v17 = vsel %vm815_vm0, %v4470_v43, %v854_v0  ;;  %v3622_v9 = vrot.slane %v335_v55, %v3263_v36 }
  0xb9   : > { %4469 = vst [vmem:[#allocation35_spill] sm:$0xff] %v3606_v52  ;;  %4471 = vst [vmem:[#allocation36_spill] sm:$0xff] %v3611_v17  ;;  %v3616_v53 = vsel %vm1612_vm1, %v4472_v15, %v1641_v5  ;;  %v1646_v0 = vrot.slane %v3508_v33, 2  ;;  %v864_v46 = vrot.slane %v3549_v21, 1  ;;  %v3628_v15 = vrot.slane %v407_v20, %v3263_v36 }
  0xba   : > { %2573 = vrot.lane.b32.xlu0 %v2572_v19, %s2848_s5  ;;  %4473 = vst [vmem:[#allocation37_spill] sm:$0xff] %v3622_v9  ;;  %v4475_v29 = vrot.slane %v3250_v42, 1  ;;  %v1152_v34 = vcombine.low %v3606_v52, %v3611_v17  ;;  %v4476_v55 = vrot.slane %v3248_v31, 1  ;;  %v4477_v33 = vcombine.high %v3300_v38, %v3382_v16 }
  0xbb   : > { %4474 = vst [vmem:[#allocation38_spill] sm:$0xff] %v3628_v15  ;;  %v368_v20 = vcombine.high %v3315_v48, %v3622_v9  ;;  %v439_v25 = vcombine.high %v3628_v15, %v4444_v28  ;;  %v4478_v52 = vrot.slane %v3250_v42, 2  ;;  %v628_v16 = vcombine.high %v3399_v61, %v3388_v3 }
  0xbc   : > { %v814_v7 = vpop.permute.xlu1 %813  ;;  %v812_v5 = vpop.permute.xlu0 %811  ;;  %v3633_v19 = vsel %vm815_vm0, %v4475_v29, %v839_v49  ;;  %v3640_v60 = vsel %vm815_vm0, %v4476_v55, %v849_v8  ;;  %v2582_v43 = vpack.i.bf16 %v645_v56, %v4477_v33  ;;  %v859_v8 = vrot.slane %v3563_v6, 1  ;;  %v4508_v9 = vld [vmem:[#allocation33_spill] sm:$0xff] }
  0xbd   : > { %v874_v29 = vrot.slane %v814_v7, 1  ;;  %v3654_v17 = vsel %vm1612_vm1, %v4478_v52, %v1636_v57  ;;  %v869_v38 = vrot.slane %v812_v5, 1  ;;  %v1136_v56 = vcombine.low %v3633_v19, %v3640_v60  ;;  %v4509_v48 = vld [vmem:[#allocation34_spill] sm:$0xff] }
  0xbe   : > { %4479 = vst [vmem:[#allocation39_spill] sm:$0xff] %v3654_v17  ;;  %2583 = vrot.lane.b32.xlu0 %v2582_v43, %s2849_s6  ;;  %v4480_v55 = vrot.slane %v3265_v10, 1  ;;  %v2547_v42 = vpack.i.bf16 %v439_v25, %v368_v20  ;;  %v4481_v52 = vrot.slane %v3280_v63, 1  ;;  %v3673_v43 = vrot.slane %v1152_v34, %v2957_v13 }
  0xbf   : > { %v4482_v49 = vrot.slane %v3254_v40, 2  ;;  %v4483_v61 = vrot.slane %v3248_v31, 2  ;;  %v1671_v20 = vrot.slane %v814_v7, 2  ;;  %v4485_v34 = vrot.slane %v3282_v4, 1 }
  0xc0   : > { %v3665_v33 = vsel %vm815_vm0, %v4480_v55, %v864_v46  ;;  %v3670_v57 = vsel %vm815_vm0, %v4481_v52, %v874_v29  ;;  %v1661_v46 = vrot.slane %v3549_v21, 2  ;;  %2548 = vrot.lane.b32.xlu1 %v2547_v42, %s2845_s30  ;;  %v4487_v31 = vrot.slane %v3267_v41, 1 }
  0xc1   : > { %v3678_v3 = vsel %vm1612_vm1, %v4482_v49, %v1651_v18  ;;  %v3683_v15 = vsel %vm1612_vm1, %v4483_v61, %v1646_v0  ;;  %v1256_v25 = vcombine.low %v3665_v33, %v3670_v57  ;;  %v3692_v40 = vsel %vm815_vm0, %v4485_v34, %v869_v38 }
  0xc2   : > { %4484 = vst [vmem:[#allocation40_spill] sm:$0xff] %v3683_v15  ;;  %4486 = vst [vmem:[#allocation41_spill] sm:$0xff] %v3692_v40  ;;  %v642_v18 = vrot.slane %v628_v16, %v3263_v36  ;;  %v3698_v0 = vsel %vm815_vm0, %v4487_v31, %v859_v8  ;;  %v1666_v49 = vrot.slane %v812_v5, 2  ;;  %v577_v29 = vcombine.low %v3306_v24, %v3385_v44 }
  0xc3   : > { %4488 = vst [vmem:[#allocation42_spill] sm:$0xff] %v3698_v0  ;;  %v4489_v21 = vcombine.high %v3471_v45, %v3468_v26  ;;  %v3707_v55 = vrot.slane %v1136_v56, %v2957_v13  ;;  %v1656_v38 = vrot.slane %v3563_v6, 2  ;;  %v3711_v16 = vrot.slane %v1256_v25, %v2957_v13 }
  0xc4   : > { %v1240_v8 = vcombine.low %v3698_v0, %v3692_v40  ;;  %v1949_v5 = vcombine.low %v3616_v53, %v3678_v3  ;;  %v2592_v42 = vpack.i.bf16 %v642_v18, %v577_v29  ;;  %v408_v52 = vcombine.high %v3532_v39, %v3529_v1 }
  0xc5   : > { %v350_v7 = vrot.slane %v4489_v21, %v3263_v36  ;;  %v646_v26 = vcombine.high %v642_v18, %v4444_v28  ;;  %v1933_v45 = vcombine.low %v3654_v17, %v3683_v15  ;;  %v4490_v6 = vrot.slane %v3265_v10, 2  ;;  %v4526_v15 = vld [vmem:[#allocation7_spill] sm:$0xff] }
  0xc6   : > { %v4492_v61 = vrot.slane %v3280_v63, 2  ;;  %v3733_v34 = vrot.slane %v1240_v8, %v2957_v13  ;;  %v4494_v1 = vrot.slane %v3282_v4, 2  ;;  %2593 = vrot.lane.b32.xlu0 %v2592_v42, %s2850_s7  ;;  %v578_v63 = vcombine.high %v3306_v24, %v3385_v44 }
  0xc7   : > { %v3725_v56 = vsel %vm1612_vm1, %v4490_v6, %v1661_v46  ;;  %v369_v10 = vcombine.low %v3321_v54, %v350_v7  ;;  %v422_v46 = vrot.slane %v408_v52, %v3263_v36  ;;  %v423_v4 = vcombine.low %v3592_v12, %v3583_v27 }
  0xc8   : > { %4491 = vst [vmem:[#allocation43_spill] sm:$0xff] %v3725_v56  ;;  %v3730_v25 = vsel %vm1612_vm1, %v4492_v61, %v1671_v20  ;;  %v3738_v39 = vsel %vm1612_vm1, %v4494_v1, %v1666_v49  ;;  %v4496_v20 = vrot.slane %v3267_v41, 2  ;;  %v1200_v31 = vcombine.low %v3707_v55, %v3673_v43 }
  0xc9   : > { %4493 = vst [vmem:[#allocation44_spill] sm:$0xff] %v3730_v25  ;;  %4495 = vst [vmem:[#allocation45_spill] sm:$0xff] %v3738_v39  ;;  %v1272_v49 = vcombine.low %v3733_v34, %v3711_v16  ;;  %v2053_v29 = vcombine.low %v3725_v56, %v3730_v25  ;;  %v2557_v21 = vpack.i.bf16 %v422_v46, %v369_v10  ;;  %v4506_v10 = vld [vmem:[#allocation30_spill] sm:$0xff] }
  0xca   : > { %v3748_v18 = vsel %vm1612_vm1, %v4496_v20, %v1656_v38  ;;  %v2602_v8 = vpack.i.bf16 %v646_v26, %v578_v63  ;;  %v440_v24 = vcombine.high %v422_v46, %v4444_v28  ;;  %v370_v44 = vcombine.high %v3321_v54, %v350_v7 }
  0xcb   : > { %4497 = vst [vmem:[#allocation46_spill] sm:$0xff] %v3748_v18  ;;  %v2037_v41 = vcombine.low %v3748_v18, %v3738_v39  ;;  %v3763_v38 = vrot.slane %v1200_v31, %v3263_v36  ;;  %v3766_v42 = vrot.slane %v1272_v49, %v3263_v36  ;;  %v3769_v52 = vrot.slane %v1949_v5, %v2957_v13 }
  0xcc   : > { %2558 = vrot.lane.b32.xlu1 %v2557_v21, %s2846_s3  ;;  %2603 = vrot.lane.b32.xlu0 %v2602_v8, %s2851_s8  ;;  %v4500_v26 = vcombine.low %v3481_v23, %v3478_v50  ;;  %v4501_v54 = vcombine.low %v3460_v51, %v3450_v2  ;;  %v3782_v61 = vrot.slane %v1933_v45, %v2957_v13 }
  0xcd   : > { %4498 = vst [vmem:[#allocation47_spill] sm:$0xff] %v3763_v38  ;;  %4499 = vst [vmem:[#allocation48_spill] sm:$0xff] %v3766_v42  ;;  %v2567_v5 = vpack.i.bf16 %v440_v24, %v370_v44  ;;  %v431_v1 = vrot.slane %v423_v4, %v3263_v36  ;;  %v1233_v46 = vcombine.high %v3357_v14, %v3763_v38  ;;  %v4512_v14 = vld [vmem:[#allocation31_spill] sm:$0xff] }
  0xce   : > { %v359_v6 = vrot.slane %v4500_v26, %v3263_v36  ;;  %v940_v7 = vrot.slane %v4501_v54, %v2957_v13  ;;  %v1304_v63 = vcombine.high %v3766_v42, %v4444_v28  ;;  %v4502_v20 = vcombine.low %v3429_v37, %v3439_v11 }
  0xcf   : > { %v4503_v45 = vcombine.low %v3559_v30, %v3573_v32  ;;  %v3800_v4 = vrot.slane %v2053_v29, %v2957_v13  ;;  %v3803_v21 = vrot.slane %v2037_v41, %v2957_v13  ;;  %v4504_v8 = vcombine.low %v3524_v59, %v3537_v62 }
  0xd0   : > { %v956_v31 = vrot.slane %v4502_v20, %v2957_v13  ;;  %v4505_v44 = vcombine.low %v3465_v47, %v3455_v22  ;;  %2568 = vrot.lane.b32.xlu1 %v2567_v5, %s2847_s4  ;;  %v371_v54 = vcombine.low %v3331_v58, %v359_v6  ;;  %v2612_v29 = vpack.i.bf16 %v1304_v63, %v1233_v46  ;;  %v4511_v5 = vld [vmem:[#allocation32_spill] sm:$0xff] }
  0xd1   : > { %v1044_v49 = vrot.slane %v4503_v45, %v2957_v13  ;;  %v1060_v24 = vrot.slane %v4504_v8, %v2957_v13  ;;  %v424_v41 = vcombine.high %v3592_v12, %v3583_v27  ;;  %v4507_v8 = vcombine.low %v3434_v35, %v4506_v10 }
  0xd2   : > { %v3813_v26 = vrot.slane %v4505_v44, %v2957_v13  ;;  %v996_v20 = vcombine.low %v940_v7, %v956_v31  ;;  %v4510_v44 = vcombine.low %v4508_v9, %v4509_v48  ;;  %v4513_v46 = vcombine.low %v4511_v5, %v4512_v14  ;;  %2613 = vrot.lane.b32.xlu0 %v2612_v29, %s2845_s30 }
  0xd3   : > { %v1068_v45 = vcombine.low %v1044_v49, %v1060_v24  ;;  %v1753_v42 = vrot.slane %v4507_v8, %v2957_v13  ;;  %v2577_v27 = vpack.i.bf16 %v431_v1, %v371_v54  ;;  %v441_v12 = vcombine.high %v431_v1, %v4444_v28 }
  0xd4   : > { %v3827_v38 = vrot.slane %v4510_v44, %v2957_v13  ;;  %v3833_v63 = vrot.slane %v4513_v46, %v2957_v13  ;;  %v3838_v18 = vrot.slane %v996_v20, %v3263_v36  ;;  %v1997_v8 = vcombine.low %v3782_v61, %v3769_v52  ;;  %v4517_v20 = vld [vmem:[#allocation25_spill] sm:$0xff]  ;;  %v4520_v46 = vld [vmem:[#allocation28_spill] sm:$0xff] }
  0xd5   : > { %v4515_v44 = vcombine.high %v3481_v23, %v3478_v50  ;;  %v3847_v56 = vrot.slane %v1068_v45, %v3263_v36  ;;  %v1793_v54 = vcombine.low %v3813_v26, %v1753_v42  ;;  %2578 = vrot.lane.b32.xlu1 %v2577_v27, %s2848_s5  ;;  %v372_v29 = vcombine.high %v3331_v58, %v359_v6 }
  0xd6   : > { %4514 = vst [vmem:[#allocation30_spill] sm:$0xff] %v3838_v18  ;;  %v1865_v1 = vcombine.low %v3827_v38, %v3833_v63  ;;  %v3857_v25 = vrot.slane %v1997_v8, %v3263_v36  ;;  %v997_v50 = vcombine.high %v940_v7, %v956_v31  ;;  %v1029_v23 = vcombine.high %v4517_v20, %v3838_v18 }
  0xd7   : > { %v366_v39 = vrot.slane %v4515_v44, %v3263_v36  ;;  %4516 = vst [vmem:[#allocation33_spill] sm:$0xff] %v3847_v56  ;;  %v1100_v45 = vcombine.high %v3847_v56, %v4444_v28  ;;  %v3864_v44 = vrot.slane %v1793_v54, %v3263_v36  ;;  %v2587_v58 = vpack.i.bf16 %v441_v12, %v372_v29  ;;  %v4521_v56 = vld [vmem:[#allocation26_spill] sm:$0xff]  ;;  %v4530_v54 = vld [vmem:[#allocation12_spill] sm:$0xff] }
  0xd8   : > { %v3867_v27 = vrot.slane %v1865_v1, %v3263_v36  ;;  %v438_v6 = vrot.slane %v424_v41, %v3263_v36  ;;  %v2069_v7 = vcombine.low %v3803_v21, %v3800_v4  ;;  %v1069_v20 = vcombine.high %v1044_v49, %v1060_v24  ;;  %v4522_v1 = vld [vmem:[#allocation24_spill] sm:$0xff]  ;;  %v4523_v41 = vld [vmem:[#allocation5_spill] sm:$0xff]  ;;  %v4524_v29 = vld [vmem:[#allocation6_spill] sm:$0xff] }
  0xd9   : > { %4518 = vst [vmem:[#allocation34_spill] sm:$0xff] %v3864_v44  ;;  %v2622_v31 = vpack.i.bf16 %v1100_v45, %v1029_v23  ;;  %2588 = vrot.lane.b32.xlu1 %v2587_v58, %s2849_s6  ;;  %v373_v12 = vcombine.low %v4522_v1, %v366_v39  ;;  %v4525_v17 = vcombine.high %v4523_v41, %v4524_v29  ;;  %v4527_v23 = vld [vmem:[#allocation8_spill] sm:$0xff]  ;;  %v4532_v41 = vld [vmem:[#allocation9_spill] sm:$0xff]  ;;  %v4533_v29 = vld [vmem:[#allocation10_spill] sm:$0xff] }
  0xda   : > { %4519 = vst [vmem:[#allocation32_spill] sm:$0xff] %v3867_v27  ;;  %v1897_v18 = vcombine.high %v3867_v27, %v4444_v28  ;;  %v4528_v45 = vcombine.high %v4526_v15, %v4527_v23  ;;  %v4529_v27 = vld [vmem:[#allocation11_spill] sm:$0xff]  ;;  %v1826_v58 = vcombine.high %v4521_v56, %v3864_v44  ;;  %v4534_v40 = vcombine.high %v4532_v41, %v4533_v29  ;;  %v4540_v29 = vld [vmem:[#allocation41_spill] sm:$0xff] }
  0xdb   : > { %v3884_v8 = vrot.slane %v4525_v17, %v3263_v36  ;;  %v4531_v49 = vcombine.low %v4529_v27, %v4530_v54  ;;  %2623 = vrot.lane.b32.xlu0 %v2622_v31, %s2845_s30  ;;  %v1011_v17 = vrot.slane %v997_v50, %v3263_v36  ;;  %v1794_v23 = vcombine.high %v3813_v26, %v1753_v42  ;;  %v4535_v31 = vld [vmem:[#allocation13_spill] sm:$0xff]  ;;  %v4536_v27 = vld [vmem:[#allocation14_spill] sm:$0xff] }
  0xdc   : > { %v3890_v0 = vrot.slane %v4528_v45, %v3263_v36  ;;  %v3906_v15 = vrot.slane %v4534_v40, %v3263_v36  ;;  %v2597_v45 = vpack.i.bf16 %v438_v6, %v373_v12  ;;  %v442_v54 = vcombine.high %v438_v6, %v4444_v28 }
  0xdd   : > { %v3896_v24 = vrot.slane %v4531_v49, %v3263_v36  ;;  %v3911_v49 = vrot.slane %v2069_v7, %v3263_v36  ;;  %v4537_v44 = vcombine.high %v4535_v31, %v4536_v27  ;;  %v949_v50 = vcombine.high %v3429_v37, %v3439_v11 }
  0xde   : > { %v2632_v41 = vpack.i.bf16 %v1897_v18, %v1826_v58  ;;  %v1083_v40 = vrot.slane %v1069_v20, %v3263_v36  ;;  %v1866_v42 = vcombine.high %v3827_v38, %v3833_v63  ;;  %v1746_v26 = vcombine.high %v3434_v35, %v4506_v10  ;;  %2598 = vrot.lane.b32.xlu1 %v2597_v45, %s2850_s7  ;;  %v4539_v38 = vld [vmem:[#allocation35_spill] sm:$0xff] }
  0xdf   : > { %v3917_v56 = vrot.slane %v4537_v44, %v3263_v36  ;;  %v933_v6 = vcombine.high %v3460_v51, %v3450_v2  ;;  %v374_v44 = vcombine.high %v4522_v1, %v366_v39  ;;  %v1201_v27 = vcombine.high %v3707_v55, %v3673_v43  ;;  %v4538_v55 = vld [vmem:[#allocation36_spill] sm:$0xff] }
  0xe0   : > { %v1730_v37 = vcombine.high %v3465_v47, %v3455_v22  ;;  %v1053_v11 = vcombine.high %v3524_v59, %v3537_v62  ;;  %2633 = vrot.lane.b32.xlu0 %v2632_v41, %s2845_s30  ;;  %v1030_v35 = vcombine.low %v3884_v8, %v1011_v17  ;;  %v1808_v18 = vrot.slane %v1794_v23, %v3263_v36  ;;  %v4541_v23 = vld [vmem:[#allocation42_spill] sm:$0xff] }
  0xe1   : > { %v1850_v2 = vcombine.high %v4511_v5, %v4512_v14  ;;  %v2607_v51 = vpack.i.bf16 %v442_v54, %v374_v44  ;;  %v2101_v39 = vcombine.high %v3911_v49, %v4444_v28  ;;  %v1273_v43 = vcombine.high %v3733_v34, %v3711_v16  ;;  %v4544_v44 = vld [vmem:[#allocation44_spill] sm:$0xff] }
  0xe2   : > { %v1037_v22 = vcombine.high %v3559_v30, %v3573_v32  ;;  %v1834_v59 = vcombine.high %v4508_v9, %v4509_v48  ;;  %v2642_v62 = vpack.i.bf16 %v1083_v40, %v1030_v35  ;;  %v1880_v47 = vrot.slane %v1866_v42, %v3263_v36  ;;  %v4542_v42 = vld [vmem:[#allocation40_spill] sm:$0xff] }
  0xe3   : > { %v1153_v10 = vcombine.high %v4539_v38, %v4538_v55  ;;  %2608 = vrot.lane.b32.xlu1 %v2607_v51, %s2851_s8  ;;  %v2030_v14 = vcombine.high %v4520_v46, %v3857_v25  ;;  %v1215_v5 = vrot.slane %v1201_v27, %v3263_v36  ;;  %v1998_v16 = vcombine.high %v3782_v61, %v3769_v52  ;;  %v4545_v27 = vld [vmem:[#allocation43_spill] sm:$0xff] }
  0xe4   : > { %v1950_v30 = vcombine.high %v3616_v53, %v3678_v3  ;;  %2643 = vrot.lane.b32.xlu0 %v2642_v62, %s2846_s3  ;;  %v1827_v48 = vcombine.low %v3890_v0, %v1808_v18  ;;  %v3963_v32 = vrot.slane %v933_v6, %v2957_v13  ;;  %v3966_v9 = vrot.slane %v949_v50, %v2957_v13 }
  0xe5   : > { %v2617_v34 = vpack.i.bf16 %v2101_v39, %v2030_v14  ;;  %v1287_v63 = vrot.slane %v1273_v43, %v3263_v36  ;;  %v2070_v20 = vcombine.high %v3803_v21, %v3800_v4  ;;  %v1101_v52 = vcombine.high %v1083_v40, %v4444_v28 }
  0xe6   : > { %v1137_v53 = vcombine.high %v3633_v19, %v3640_v60  ;;  %v2652_v3 = vpack.i.bf16 %v1880_v47, %v1827_v48  ;;  %v3975_v61 = vrot.slane %v1037_v22, %v2957_v13  ;;  %v3978_v7 = vrot.slane %v1053_v11, %v2957_v13  ;;  %v4546_v22 = vld [vmem:[#allocation45_spill] sm:$0xff] }
  0xe7   : > { %v3981_v54 = vrot.slane %v1153_v10, %v2957_v13  ;;  %2618 = vrot.lane.b32.xlu1 %v2617_v34, %s2845_s30  ;;  %v1234_v1 = vcombine.low %v3906_v15, %v1215_v5  ;;  %v2012_v4 = vrot.slane %v1998_v16, %v3263_v36  ;;  %v1031_v21 = vcombine.high %v3884_v8, %v1011_v17 }
  0xe8   : > { %v1257_v19 = vcombine.high %v3665_v33, %v3670_v57  ;;  %2653 = vrot.lane.b32.xlu0 %v2652_v3, %s2846_s3  ;;  %v1012_v60 = vcombine.low %v3963_v32, %v3966_v9  ;;  %v3993_v12 = vrot.slane %v1730_v37, %v2957_v13  ;;  %v3996_v58 = vrot.slane %v1746_v26, %v2957_v13  ;;  %v4543_v26 = vld [vmem:[#allocation39_spill] sm:$0xff] }
  0xe9   : > { %v1241_v45 = vcombine.high %v4541_v23, %v4540_v29  ;;  %v2627_v31 = vpack.i.bf16 %v1287_v63, %v1234_v1  ;;  %v2084_v8 = vrot.slane %v2070_v20, %v3263_v36  ;;  %v2662_v17 = vpack.i.bf16 %v1101_v52, %v1031_v21  ;;  %v4549_v20 = vld [vmem:[#allocation16_spill] sm:$0xff]  ;;  %v4551_v23 = vld [vmem:[#allocation17_spill] sm:$0xff] }
  0xea   : > { %v1898_v33 = vcombine.high %v1880_v47, %v4444_v28  ;;  %v1084_v57 = vcombine.low %v3975_v61, %v3978_v7  ;;  %v4005_v50 = vrot.slane %v1834_v59, %v2957_v13  ;;  %v4008_v41 = vrot.slane %v1850_v2, %v2957_v13  ;;  %v4547_v59 = vld [vmem:[#allocation46_spill] sm:$0xff] }
  0xeb   : > { %v4011_v40 = vrot.slane %v1137_v53, %v2957_v13  ;;  %v1934_v6 = vcombine.high %v4543_v26, %v4542_v42  ;;  %v2054_v37 = vcombine.high %v4545_v27, %v4544_v44  ;;  %2628 = vrot.lane.b32.xlu1 %v2627_v31, %s2846_s3  ;;  %v2031_v11 = vcombine.low %v3917_v56, %v2012_v4  ;;  %v4554_v44 = vld [vmem:[#allocation19_spill] sm:$0xff]  ;;  %v4555_v27 = vld [vmem:[#allocation20_spill] sm:$0xff] }
  0xec   : > { %v4020_v35 = vrot.slane %v1257_v19, %v2957_v13  ;;  %2663 = vrot.lane.b32.xlu0 %v2662_v17, %s2847_s4  ;;  %v1828_v2 = vcombine.high %v3890_v0, %v1808_v18  ;;  %v1020_v51 = vrot.slane %v1012_v60, %v3263_v36  ;;  %v1809_v39 = vcombine.low %v3993_v12, %v3996_v58 }
  0xed   : > { %v4028_v43 = vrot.slane %v1241_v45, %v2957_v13  ;;  %v2038_v62 = vcombine.high %v4547_v59, %v4546_v22  ;;  %v2637_v47 = vpack.i.bf16 %v2084_v8, %v2031_v11  ;;  %v1305_v55 = vcombine.high %v1287_v63, %v4444_v28  ;;  %v4552_v45 = vld [vmem:[#allocation18_spill] sm:$0xff] }
  0xee   : > { %v2672_v38 = vpack.i.bf16 %v1898_v33, %v1828_v2  ;;  %v1092_v10 = vrot.slane %v1084_v57, %v3263_v36  ;;  %v1881_v0 = vcombine.low %v4005_v50, %v4008_v41  ;;  %v4037_v18 = vrot.slane %v1950_v30, %v2957_v13  ;;  %v4548_v30 = vld [vmem:[#allocation15_spill] sm:$0xff] }
  0xef   : > { %v4040_v14 = vrot.slane %v1934_v6, %v2957_v13  ;;  %2638 = vrot.lane.b32.xlu1 %v2637_v47, %s2846_s3  ;;  %v1235_v16 = vcombine.high %v3906_v15, %v1215_v5  ;;  %v1216_v48 = vcombine.low %v4011_v40, %v3981_v54  ;;  %v4047_v34 = vrot.slane %v2054_v37, %v2957_v13 }
  0xf0   : > { %2673 = vrot.lane.b32.xlu0 %v2672_v38, %s2847_s4  ;;  %v1032_v63 = vcombine.low %v3896_v24, %v1020_v51  ;;  %v4550_v52 = vcombine.low %v4548_v30, %v4549_v20  ;;  %v1817_v3 = vrot.slane %v1809_v39, %v3263_v36  ;;  %v4057_v1 = vrot.slane %v2038_v62, %v2957_v13 }
  0xf1   : > { %v2647_v15 = vpack.i.bf16 %v1305_v55, %v1235_v16  ;;  %v2102_v5 = vcombine.high %v2084_v8, %v4444_v28  ;;  %v1288_v21 = vcombine.low %v4028_v43, %v4020_v35  ;;  %v1889_v60 = vrot.slane %v1881_v0, %v3263_v36 }
  0xf2   : > { %v1785_v53 = vrot.slane %v4550_v52, %v3263_v36  ;;  %v2682_v19 = vpack.i.bf16 %v1092_v10, %v1032_v63  ;;  %v2032_v29 = vcombine.high %v3917_v56, %v2012_v4  ;;  %v4553_v31 = vcombine.low %v4551_v23, %v4552_v45 }
  0xf3   : > { %2648 = vrot.lane.b32.xlu1 %v2647_v15, %s2847_s4  ;;  %v1224_v13 = vrot.slane %v1216_v48, %v3263_v36  ;;  %v2013_v8 = vcombine.low %v4040_v14, %v4037_v18  ;;  %v1296_v42 = vrot.slane %v1288_v21, %v3263_v36  ;;  %v2085_v26 = vcombine.low %v4057_v1, %v4047_v34 }
  0xf4   : > { %v1192_v17 = vrot.slane %v4553_v31, %v3263_v36  ;;  %2683 = vrot.lane.b32.xlu0 %v2682_v19, %s2848_s5  ;;  %v1829_v33 = vcombine.low %v1785_v53, %v1817_v3  ;;  %v2657_v57 = vpack.i.bf16 %v2102_v5, %v2032_v29  ;;  %v1102_v4 = vcombine.high %v1092_v10, %v4444_v28 }
  0xf5   : > { %v4556_v37 = vcombine.low %v4554_v44, %v4555_v27  ;;  %v2021_v2 = vrot.slane %v2013_v8, %v3263_v36  ;;  %v1033_v39 = vcombine.high %v3896_v24, %v1020_v51  ;;  %v1013_v22 = vcombine.high %v3963_v32, %v3966_v9  ;;  %v4557_v24 = vld [vmem:[#allocation11_spill] sm:$0xff]  ;;  %v4558_v51 = vld [vmem:[#allocation12_spill] sm:$0xff] }
  0xf6   : > { %v2692_v56 = vpack.i.bf16 %v1889_v60, %v1829_v33  ;;  %v1236_v6 = vcombine.low %v1192_v17, %v1224_v13  ;;  %v2093_v62 = vrot.slane %v2085_v26, %v3263_v36  ;;  %v1899_v55 = vcombine.high %v1889_v60, %v4444_v28 }
  0xf7   : > { %2658 = vrot.lane.b32.xlu1 %v2657_v57, %s2847_s4  ;;  %v1989_v11 = vrot.slane %v4556_v37, %v3263_v36  ;;  %v2702_v47 = vpack.i.bf16 %v1102_v4, %v1033_v39  ;;  %v1085_v38 = vcombine.high %v3975_v61, %v3978_v7  ;;  %v1830_v0 = vcombine.high %v1785_v53, %v1817_v3  ;;  %s4302_s4 = scalar_lea.hbm %s4351_s2, %s2450_s27 }
  0xf8   : > { %2693 = vrot.lane.b32.xlu0 %v2692_v56, %s2848_s5  ;;  %v2667_v59 = vpack.i.bf16 %v1296_v42, %v1236_v6  ;;  %v4559_v16 = vcombine.high %v4557_v24, %v4558_v51  ;;  %v1027_v9 = vrot.slane %v1013_v22, %v3263_v36  ;;  %v1810_v48 = vcombine.high %v3993_v12, %v3996_v58 }
  0xf9   : > { %v2033_v10 = vcombine.low %v1989_v11, %v2021_v2  ;;  %v1306_v52 = vcombine.high %v1296_v42, %v4444_v28  ;;  %v2712_v61 = vpack.i.bf16 %v1899_v55, %v1830_v0  ;;  %v1099_v7 = vrot.slane %v1085_v38, %v3263_v36 }
  0xfa   : > { %v995_v32 = vrot.slane %v4559_v16, %v3263_v36  ;;  %v1882_v15 = vcombine.high %v4005_v50, %v4008_v41  ;;  %v1237_v53 = vcombine.high %v1192_v17, %v1224_v13  ;;  %v1217_v3 = vcombine.high %v4011_v40, %v3981_v54 }
  0xfb   : > { %2668 = vrot.lane.b32.xlu1 %v2667_v59, %s2848_s5  ;;  %v2677_v63 = vpack.i.bf16 %v2093_v62, %v2033_v10  ;;  %v4560_v12 = vcombine.high %v4548_v30, %v4549_v20  ;;  %v1824_v21 = vrot.slane %v1810_v48, %v3263_v36  ;;  %v2103_v60 = vcombine.high %v2093_v62, %v4444_v28 }
  0xfc   : > { %2703 = vrot.lane.b32.xlu0 %v2702_v47, %s2849_s6  ;;  %v1034_v5 = vcombine.low %v995_v32, %v1027_v9  ;;  %v2687_v19 = vpack.i.bf16 %v1306_v52, %v1237_v53  ;;  %v1289_v50 = vcombine.high %v4028_v43, %v4020_v35  ;;  %v1896_v29 = vrot.slane %v1882_v15, %v3263_v36  ;;  %v4563_v52 = vld [vmem:[#allocation29_spill] sm:$0xff]  ;;  %v4565_v15 = vld [vmem:[#allocation22_spill] sm:$0xff] }
  0xfd   : > { %v1792_v58 = vrot.slane %v4560_v12, %v3263_v36  ;;  %v2034_v54 = vcombine.high %v1989_v11, %v2021_v2  ;;  %v4561_v40 = vcombine.high %v4551_v23, %v4552_v45  ;;  %v1231_v20 = vrot.slane %v1217_v3, %v3263_v36 }
  0xfe   : > { %v2722_v41 = vpack.i.bf16 %v1099_v7, %v1034_v5  ;;  %v2014_v31 = vcombine.high %v4040_v14, %v4037_v18  ;;  %v1303_v43 = vrot.slane %v1289_v50, %v3263_v36  ;;  %v2086_v13 = vcombine.high %v4057_v1, %v4047_v34 }
  0xff   : > { %2678 = vrot.lane.b32.xlu1 %v2677_v63, %s2848_s5  ;;  %v1199_v30 = vrot.slane %v4561_v40, %v3263_v36  ;;  %v1831_v17 = vcombine.low %v1792_v58, %v1824_v21  ;;  %v2697_v35 = vpack.i.bf16 %v2103_v60, %v2034_v54  ;;  %v1103_v33 = vcombine.high %v1099_v7, %v4444_v28  ;;  %v4564_v7 = vld [vmem:[#allocation21_spill] sm:$0xff]  ;;  %s2332_s5 = scalar_lea.sflag [#allocation3], %s158_s25 }
 0x100   : > { %2713 = vrot.lane.b32.xlu0 %v2712_v61, %s2849_s6  ;;  %v4562_v45 = vcombine.high %v4554_v44, %v4555_v27  ;;  %v2028_v14 = vrot.slane %v2014_v31, %v3263_v36  ;;  %v1035_v57 = vcombine.high %v995_v32, %v1027_v9  ;;  %v2100_v26 = vrot.slane %v2086_v13, %v3263_v36 }
 0x101   : > { %v2732_v8 = vpack.i.bf16 %v1896_v29, %v1831_v17  ;;  %v1238_v23 = vcombine.low %v1199_v30, %v1231_v20  ;;  %v1307_v4 = vcombine.high %v1303_v43, %v4444_v28  ;;  %v1239_v6 = vcombine.high %v1199_v30, %v1231_v20 }
 0x102   : > { %v1996_v18 = vrot.slane %v4562_v45, %v3263_v36  ;;  %v2742_v34 = vpack.i.bf16 %v1103_v33, %v1035_v57  ;;  %v2104_v27 = vcombine.high %v2100_v26, %v4444_v28  ;;  %v1900_v36 = vcombine.high %v1896_v29, %v4444_v28 }
 0x103   : > { %2688 = vrot.lane.b32.xlu1 %v2687_v19, %s2849_s6  ;;  %v2707_v42 = vpack.i.bf16 %v1303_v43, %v1238_v23  ;;  %v2727_v44 = vpack.i.bf16 %v1307_v4, %v1239_v6  ;;  %v1832_v2 = vcombine.high %v1792_v58, %v1824_v21  ;;  %v4566_v53 = vcombine.low %v4564_v7, %v4565_v15 }
 0x104   : > { %2723 = vrot.lane.b32.xlu0 %v2722_v41, %s2850_s7  ;;  %v2035_v1 = vcombine.low %v1996_v18, %v2028_v14  ;;  %v2036_v37 = vcombine.high %v1996_v18, %v2028_v14 }
 0x105   : > { %v2747_v39 = vpack.i.bf16 %v1900_v36, %v1832_v2 }
 0x106   : > { %v2717_v56 = vpack.i.bf16 %v2100_v26, %v2035_v1  ;;  %v2737_v11 = vpack.i.bf16 %v2104_v27, %v2036_v37  ;;  %v4569_v26 = vld [vmem:[#allocation27_spill] sm:$0xff] }
 0x107   : > { %2698 = vrot.lane.b32.xlu1 %v2697_v35, %s2849_s6  ;;  %s2853_s6 = smov [#allocation2]  }
 0x108   : > { %2733 = vrot.lane.b32.xlu0 %v2732_v8, %s2850_s7 }
 0x10b   : > { %2708 = vrot.lane.b32.xlu1 %v2707_v42, %s2850_s7 }
 0x10c   : > { %2743 = vrot.lane.b32.xlu0 %v2742_v34, %s2851_s8  ;;  %v4570_v34 = vld [vmem:[#allocation47_spill] sm:$0xff] }
 0x10d   : > { %v4571_v1 = vcombine.low %v4569_v26, %v4570_v34 }
 0x10f   : > { %2718 = vrot.lane.b32.xlu1 %v2717_v56, %s2850_s7  ;;  %s2764_s7 = sshll.u32 %s2853_s6, 4  ;;  %s2765_s7 = int_to_ptr.vmem [resolvable:$false] %s2764_s7 }
 0x110   : > { %p2767_p1 = scmp.lt.s32.totalorder %s4304_s29, %s2765_s7 }
 0x113   : > { %2728 = vrot.lane.b32.xlu1 %v2727_v44, %s2851_s8 }
 0x117   : > { %2738 = vrot.lane.b32.xlu1 %v2737_v11, %s2851_s8 }
 0x11b   : > { %2748 = vrot.lane.b32.xlu1 %v2747_v39, %s2851_s8  ;;  %s2766_s8 = scalar_lea.vmem %s2765_s7, 512 }
 0x11c   : > { %p2768_p2 = scmp.lt.s32.totalorder %s2766_s8, %s2760_s12 }
 0x11d   : > { %v2544_v22 = vpop.permute.xlu0 %2543 }
 0x11e   : > { %v2546_v38 = vunpack.i.h.bf16 %v2544_v22  ;;  %v2545_v10 = vunpack.i.l.bf16 %v2544_v22  ;;  %v4572_v22 = vld [vmem:[#allocation23_spill] sm:$0xff]  ;;  %p2769_p3 = por %p2768_p2, %p2767_p1 }
 0x120   : > { %v781_v61 = vsel %vm759_vm2, %v4563_v52, %v2546_v38  ;;  %v780_v3 = vsel %vm759_vm2, %v4566_v53, %v2545_v10  ;;  %p2770_p5 = pnand %p2769_p3, %p2763_p0 }
 0x121   : > { %v2554_v59 = vpop.permute.xlu0 %2553 }
 0x122   : > { %v2556_v0 = vunpack.i.h.bf16 %v2554_v59  ;;  %v2555_v24 = vunpack.i.l.bf16 %v2554_v59  ;;  %v4573_v59 = vld [vmem:[#allocation37_spill] sm:$0xff] }
 0x124   : > { %v782_v58 = vsel %vm762_vm3, %v780_v3, %v2555_v24  ;;  %v783_v21 = vsel %vm762_vm3, %v781_v61, %v2556_v0  ;;  %v4575_v0 = vld [vmem:[#allocation25_spill] sm:$0xff]  ;;  %v4576_v24 = vld [vmem:[#allocation30_spill] sm:$0xff] }
 0x126   : > { %v2564_v62 = vpop.permute.xlu0 %2563 }
 0x127   : > { %v2566_v16 = vunpack.i.h.bf16 %v2564_v62  ;;  %v2565_v32 = vunpack.i.l.bf16 %v2564_v62  ;;  %v4574_v62 = vcombine.low %v4572_v22, %v4573_v59  ;;  %v4584_v22 = vcombine.low %v4520_v46, %v3857_v25 }
 0x129   : > { %v784_v50 = vsel %vm765_vm4, %v782_v58, %v2565_v32  ;;  %v785_v41 = vsel %vm765_vm4, %v783_v21, %v2566_v16  ;;  %v4577_v16 = vcombine.low %v4575_v0, %v4576_v24  ;;  %v4585_v0 = vld [vmem:[#allocation48_spill] sm:$0xff] }
 0x12c   : > { %v2574_v47 = vpop.permute.xlu0 %2573 }
 0x12d   : > { %v2576_v9 = vunpack.i.h.bf16 %v2574_v47  ;;  %v2575_v48 = vunpack.i.l.bf16 %v2574_v47 }
 0x12f   : > { %v786_v29 = vsel %vm768_vm5, %v784_v50, %v2575_v48  ;;  %v787_v54 = vsel %vm768_vm5, %v785_v41, %v2576_v9  ;;  %v4579_v50 = vld [vmem:[#allocation26_spill] sm:$0xff] }
 0x130   : > { %v2584_v55 = vpop.permute.xlu0 %2583  ;;  %v4580_v41 = vld [vmem:[#allocation34_spill] sm:$0xff] }
 0x131   : > { %v2586_v5 = vunpack.i.h.bf16 %v2584_v55  ;;  %v2585_v12 = vunpack.i.l.bf16 %v2584_v55 }
 0x132   : > { %v2549_v51 = vpop.permute.xlu1 %2548 }
 0x133   : > { %v788_v20 = vsel %vm771_vm6, %v786_v29, %v2585_v12  ;;  %v789_v31 = vsel %vm771_vm6, %v787_v54, %v2586_v5  ;;  %v2550_v4 = vunpack.i.l.bf16 %v2549_v51  ;;  %v2551_v44 = vunpack.i.h.bf16 %v2549_v51  ;;  %v4578_v51 = vld [vmem:[#allocation38_spill] sm:$0xff] }
 0x134   : > { %v4581_v29 = vcombine.low %v4579_v50, %v4580_v41 }
 0x135   : > { %v760_v47 = vsel %vm759_vm2, %v4574_v62, %v2550_v4  ;;  %v761_v9 = vsel %vm759_vm2, %v4578_v51, %v2551_v44 }
 0x138   : > { %v2594_v63 = vpop.permute.xlu0 %2593 }
 0x139   : > { %v2596_v19 = vunpack.i.h.bf16 %v2594_v63  ;;  %v2595_v60 = vunpack.i.l.bf16 %v2594_v63 }
 0x13b   : > { %v790_v43 = vsel %vm774_vm7, %v788_v20, %v2595_v60  ;;  %v791_v13 = vsel %vm774_vm7, %v789_v31, %v2596_v19 }
 0x13e   : > { %v2559_v40 = vpop.permute.xlu1 %2558  ;;  %v2604_v30 = vpop.permute.xlu0 %2603 }
 0x13f   : > { %v2606_v17 = vunpack.i.h.bf16 %v2604_v30  ;;  %v2605_v35 = vunpack.i.l.bf16 %v2604_v30  ;;  %v2560_v27 = vunpack.i.l.bf16 %v2559_v40  ;;  %v2561_v11 = vunpack.i.h.bf16 %v2559_v40 }
 0x141   : > { %v792_v8 = vsel %vm777_vm8, %v790_v43, %v2605_v35  ;;  %v793_v33 = vsel %vm777_vm8, %v791_v13, %v2606_v17  ;;  %v763_v48 = vsel %vm762_vm3, %v760_v47, %v2560_v27  ;;  %v764_v7 = vsel %vm762_vm3, %v761_v9, %v2561_v11 }
 0x142   : > { %v2569_v45 = vpop.permute.xlu1 %2568  ;;  %v2457_v18 = vpack.c.bf16 %v793_v33, %v792_v8  ;;  %v4582_v33 = vld [vmem:[#allocation33_spill] sm:$0xff] }
 0x143   : > { %v2571_v2 = vunpack.i.h.bf16 %v2569_v45  ;;  %v2570_v39 = vunpack.i.l.bf16 %v2569_v45 }
 0x144   : > { %2459 = vmatprep.subr.msk.bf16.mxu0 %vm4165_vm11, %v2457_v18  ;;  %v4171_v14 = vpop.permute.xlu0 %2613 }
 0x145   : > { %v2615_v57 = vunpack.i.l.bf16 %v4171_v14  ;;  %v766_v5 = vsel %vm765_vm4, %v763_v48, %v2570_v39  ;;  %v767_v12 = vsel %vm765_vm4, %v764_v7, %v2571_v2  ;;  %v2616_v27 = vunpack.i.h.bf16 %v4171_v14  ;;  %v4583_v2 = vld [vmem:[#allocation32_spill] sm:$0xff] }
 0x147   : > { %v2579_v42 = vpop.permute.xlu1 %2578  ;;  %v4178_v56 = vsel %vm759_vm2, %v4571_v1, %v2615_v57  ;;  %v1435_v24 = vsel %vm759_vm2, %v4585_v0, %v2616_v27 }
 0x148   : > { %v2581_v55 = vunpack.i.h.bf16 %v2579_v42  ;;  %v2580_v38 = vunpack.i.l.bf16 %v2579_v42 }
 0x14a   : > { %v769_v21 = vsel %vm768_vm5, %v766_v5, %v2580_v38  ;;  %v770_v19 = vsel %vm768_vm5, %v767_v12, %v2581_v55 }
 0x14b   : > { %v2589_v6 = vpop.permute.xlu1 %2588 }
 0x14c   : > { %v2591_v63 = vunpack.i.h.bf16 %v2589_v6  ;;  %v2590_v52 = vunpack.i.l.bf16 %v2589_v6 }
 0x14d   : > { %v2624_v37 = vpop.permute.xlu0 %2623 }
 0x14e   : > { %v2625_v36 = vunpack.i.l.bf16 %v2624_v37  ;;  %v2626_v58 = vunpack.i.h.bf16 %v2624_v37  ;;  %v772_v40 = vsel %vm771_vm6, %v769_v21, %v2590_v52  ;;  %v773_v30 = vsel %vm771_vm6, %v770_v19, %v2591_v63 }
 0x150   : > { %v2599_v10 = vpop.permute.xlu1 %2598  ;;  %v1420_v32 = vsel %vm759_vm2, %v4577_v16, %v2625_v36  ;;  %v1421_v45 = vsel %vm759_vm2, %v4582_v33, %v2626_v58  ;;  %v794_v36 = vld [vmem:[%s4350_s1] sm:$0xff] }
 0x151   : > { %v2601_v15 = vunpack.i.h.bf16 %v2599_v10  ;;  %v2600_v53 = vunpack.i.l.bf16 %v2599_v10 }
 0x152   : > { %v2634_v61 = vpop.permute.xlu0 %2633 }
 0x153   : > { %v2635_v3 = vunpack.i.l.bf16 %v2634_v61  ;;  %v775_v35 = vsel %vm774_vm7, %v772_v40, %v2600_v53  ;;  %v776_v43 = vsel %vm774_vm7, %v773_v30, %v2601_v15  ;;  %v2636_v18 = vunpack.i.h.bf16 %v2634_v61 }
 0x155   : > { %v2609_v60 = vpop.permute.xlu1 %2608  ;;  %v2217_v54 = vsel %vm759_vm2, %v4581_v29, %v2635_v3  ;;  %v2218_v39 = vsel %vm759_vm2, %v4583_v2, %v2636_v18 }
 0x156   : > { %v2611_v20 = vunpack.i.h.bf16 %v2609_v60  ;;  %v2610_v31 = vunpack.i.l.bf16 %v2609_v60  ;;  %v2644_v17 = vpop.permute.xlu0 %2643 }
 0x157   : > { %v2646_v13 = vunpack.i.h.bf16 %v2644_v17  ;;  %v2645_v8 = vunpack.i.l.bf16 %v2644_v17 }
 0x158   : > { %v778_v57 = vsel %vm777_vm8, %v775_v35, %v2610_v31  ;;  %v779_v42 = vsel %vm777_vm8, %v776_v43, %v2611_v20 }
 0x159   : > { %v2619_v26 = vpop.permute.xlu1 %2618  ;;  %v2460_v34 = vpack.c.bf16 %v779_v42, %v778_v57  ;;  %v1422_v1 = vsel %vm762_vm3, %v1420_v32, %v2645_v8  ;;  %v1423_v4 = vsel %vm762_vm3, %v1421_v45, %v2646_v13 }
 0x15a   : > { %v2620_v6 = vunpack.i.l.bf16 %v2619_v26  ;;  %v2654_v44 = vpop.permute.xlu0 %2653  ;;  %v2621_v16 = vunpack.i.h.bf16 %v2619_v26 }
 0x15b   : > { %2462 = vmatpush1.bf16.msk.msra.mxu0 %vm4165_vm11, %v2460_v34  ;;  %v2656_v37 = vunpack.i.h.bf16 %v2654_v44  ;;  %v2655_v11 = vunpack.i.l.bf16 %v2654_v44 }
 0x15c   : > { %v2231_v59 = vsel %vm759_vm2, %v4584_v22, %v2620_v6  ;;  %v2232_v15 = vsel %vm759_vm2, %v3911_v49, %v2621_v16 }
 0x15d   : > { %v2629_v62 = vpop.permute.xlu1 %2628  ;;  %v2219_v14 = vsel %vm762_vm3, %v2217_v54, %v2655_v11  ;;  %v2220_v47 = vsel %vm762_vm3, %v2218_v39, %v2656_v37 }
 0x15e   : > { %v2631_v55 = vunpack.i.h.bf16 %v2629_v62  ;;  %v2630_v38 = vunpack.i.l.bf16 %v2629_v62  ;;  %v2664_v10 = vpop.permute.xlu0 %2663  ;;  %2440 = vmatmul.mubr.msk.f32.vlgmr.msra.gmra.mrb[0].mxu0 %vm1450_vm12, %v794_v36 }
 0x15f   : > { %v2666_v32 = vunpack.i.h.bf16 %v2664_v10  ;;  %v2665_v51 = vunpack.i.l.bf16 %v2664_v10  ;;  %2320 = vmatprep.mubr.f32.mxu0 %v4444_v28 }
 0x160   : > { %v1437_v25 = vsel %vm762_vm3, %v1435_v24, %v2631_v55  ;;  %v1436_v46 = vsel %vm762_vm3, %v4178_v56, %v2630_v38 }
 0x161   : > { %v2639_v9 = vpop.permute.xlu1 %2638  ;;  %v1424_v48 = vsel %vm765_vm4, %v1422_v1, %v2665_v51  ;;  %v1425_v63 = vsel %vm765_vm4, %v1423_v4, %v2666_v32 }
 0x162   : > { %v2641_v52 = vunpack.i.h.bf16 %v2639_v9  ;;  %v2640_v61 = vunpack.i.l.bf16 %v2639_v9  ;;  %v2674_v7 = vpop.permute.xlu0 %2673 }
 0x163   : > { %v2676_v53 = vunpack.i.h.bf16 %v2674_v7  ;;  %v2675_v3 = vunpack.i.l.bf16 %v2674_v7 }
 0x164   : > { %v2233_v28 = vsel %vm762_vm3, %v2231_v59, %v2640_v61  ;;  %v2234_v5 = vsel %vm762_vm3, %v2232_v15, %v2641_v52 }
 0x165   : > { %v2649_v12 = vpop.permute.xlu1 %2648  ;;  %v2221_v56 = vsel %vm765_vm4, %v2219_v14, %v2675_v3  ;;  %v2222_v58 = vsel %vm765_vm4, %v2220_v47, %v2676_v53 }
 0x166   : > { %v2651_v21 = vunpack.i.h.bf16 %v2649_v12  ;;  %v2650_v19 = vunpack.i.l.bf16 %v2649_v12  ;;  %v2684_v60 = vpop.permute.xlu0 %2683 }
 0x167   : > { %v2686_v50 = vunpack.i.h.bf16 %v2684_v60  ;;  %v2685_v41 = vunpack.i.l.bf16 %v2684_v60 }
 0x168   : > { %v1438_v29 = vsel %vm765_vm4, %v1436_v46, %v2650_v19  ;;  %v1439_v49 = vsel %vm765_vm4, %v1437_v25, %v2651_v21 }
 0x169   : > { %v2659_v54 = vpop.permute.xlu1 %2658  ;;  %v1426_v40 = vsel %vm768_vm5, %v1424_v48, %v2685_v41  ;;  %v1427_v30 = vsel %vm768_vm5, %v1425_v63, %v2686_v50 }
 0x16a   : > { %v2661_v20 = vunpack.i.h.bf16 %v2659_v54  ;;  %v2660_v31 = vunpack.i.l.bf16 %v2659_v54  ;;  %v2694_v17 = vpop.permute.xlu0 %2693 }
 0x16b   : > { %v2696_v35 = vunpack.i.h.bf16 %v2694_v17  ;;  %v2695_v43 = vunpack.i.l.bf16 %v2694_v17 }
 0x16c   : > { %v2235_v13 = vsel %vm765_vm4, %v2233_v28, %v2660_v31  ;;  %v2236_v8 = vsel %vm765_vm4, %v2234_v5, %v2661_v20 }
 0x16d   : > { %v2669_v33 = vpop.permute.xlu1 %2668  ;;  %v4246_v45 = vsel %vm768_vm5, %v2221_v56, %v2695_v43  ;;  %v4249_v18 = vsel %vm768_vm5, %v2222_v58, %v2696_v35 }
 0x16e   : > { %v2671_v57 = vunpack.i.h.bf16 %v2669_v33  ;;  %v2670_v42 = vunpack.i.l.bf16 %v2669_v33  ;;  %v2704_v26 = vpop.permute.xlu0 %2703 }
 0x16f   : > { %v2706_v59 = vunpack.i.h.bf16 %v2704_v26  ;;  %v2705_v62 = vunpack.i.l.bf16 %v2704_v26 }
 0x170   : > { %v1440_v34 = vsel %vm768_vm5, %v1438_v29, %v2670_v42  ;;  %v1441_v1 = vsel %vm768_vm5, %v1439_v49, %v2671_v57  ;;  %v2434_v42 = vld [vmem:[%s4350_s1 + $0x8] sm:$0xff] }
 0x171   : > { %v2679_v4 = vpop.permute.xlu1 %2678  ;;  %v1428_v10 = vsel %vm771_vm6, %v1426_v40, %v2705_v62  ;;  %v1429_v0 = vsel %vm771_vm6, %v1427_v30, %v2706_v59 }
 0x172   : > { %v2681_v6 = vunpack.i.h.bf16 %v2679_v4  ;;  %v2680_v44 = vunpack.i.l.bf16 %v2679_v4  ;;  %v2714_v27 = vpop.permute.xlu0 %2713 }
 0x173   : > { %v2716_v29 = vunpack.i.h.bf16 %v2714_v27  ;;  %v2715_v49 = vunpack.i.l.bf16 %v2714_v27 }
 0x174   : > { %v2237_v37 = vsel %vm768_vm5, %v2235_v13, %v2680_v44  ;;  %v2238_v11 = vsel %vm768_vm5, %v2236_v8, %v2681_v6 }
 0x175   : > { %v2689_v36 = vpop.permute.xlu1 %2688  ;;  %v2226_v4 = vsel %vm771_vm6, %v4249_v18, %v2716_v29  ;;  %v2441_v18 = vld [vmem:[%s4350_s1 + $0x10] sm:$0xff] }
 0x176   : > { %v2724_v2 = vpop.permute.xlu0 %2723  ;;  %v2691_v25 = vunpack.i.h.bf16 %v2689_v36  ;;  %v2690_v46 = vunpack.i.l.bf16 %v2689_v36 }
 0x177   : > { %v2726_v14 = vunpack.i.h.bf16 %v2724_v2  ;;  %v2725_v47 = vunpack.i.l.bf16 %v2724_v2 }
 0x178   : > { %v1442_v15 = vsel %vm771_vm6, %v1440_v34, %v2690_v46  ;;  %v1443_v53 = vsel %vm771_vm6, %v1441_v1, %v2691_v25  ;;  %v2225_v1 = vsel %vm771_vm6, %v4246_v45, %v2715_v49 }
 0x179   : > { %v2699_v39 = vpop.permute.xlu1 %2698  ;;  %v1430_v32 = vsel %vm774_vm7, %v1428_v10, %v2725_v47  ;;  %v1431_v51 = vsel %vm774_vm7, %v1429_v0, %v2726_v14 }
 0x17a   : > { %v2734_v22 = vpop.permute.xlu0 %2733  ;;  %v2701_v28 = vunpack.i.h.bf16 %v2699_v39  ;;  %v2700_v5 = vunpack.i.l.bf16 %v2699_v39 }
 0x17b   : > { %v2736_v35 = vunpack.i.h.bf16 %v2734_v22  ;;  %v2735_v43 = vunpack.i.l.bf16 %v2734_v22 }
 0x17c   : > { %v2239_v30 = vsel %vm771_vm6, %v2237_v37, %v2700_v5  ;;  %v2240_v20 = vsel %vm771_vm6, %v2238_v11, %v2701_v28 }
 0x17d   : > { %v2709_v55 = vpop.permute.xlu1 %2708  ;;  %v2227_v27 = vsel %vm774_vm7, %v2225_v1, %v2735_v43  ;;  %v2228_v37 = vsel %vm774_vm7, %v2226_v4, %v2736_v35 }
 0x17e   : > { %v2744_v38 = vpop.permute.xlu0 %2743  ;;  %v2711_v61 = vunpack.i.h.bf16 %v2709_v55  ;;  %v2710_v7 = vunpack.i.l.bf16 %v2709_v55 }
 0x17f   : > { %v2746_v24 = vunpack.i.h.bf16 %v2744_v38  ;;  %v2745_v16 = vunpack.i.l.bf16 %v2744_v38 }
 0x180   : > { %v1444_v19 = vsel %vm774_vm7, %v1442_v15, %v2710_v7  ;;  %v1445_v60 = vsel %vm774_vm7, %v1443_v53, %v2711_v61 }
 0x181   : > { %v2719_v9 = vpop.permute.xlu1 %2718  ;;  %v1432_v48 = vsel %vm777_vm8, %v1430_v32, %v2745_v16  ;;  %v1433_v63 = vsel %vm777_vm8, %v1431_v51, %v2746_v24 }
 0x182   : > { %v2454_v52 = vpack.c.bf16 %v1433_v63, %v1432_v48  ;;  %v2721_v58 = vunpack.i.h.bf16 %v2719_v9  ;;  %v2720_v21 = vunpack.i.l.bf16 %v2719_v9 }
 0x184   : > { %v2241_v13 = vsel %vm774_vm7, %v2239_v30, %v2720_v21  ;;  %v2242_v8 = vsel %vm774_vm7, %v2240_v20, %v2721_v58 }
 0x185   : > { %v2729_v3 = vpop.permute.xlu1 %2728 }
 0x186   : > { %v2731_v12 = vunpack.i.h.bf16 %v2729_v3  ;;  %v2730_v56 = vunpack.i.l.bf16 %v2729_v3 }
 0x188   : > { %v1446_v50 = vsel %vm777_vm8, %v1444_v19, %v2730_v56  ;;  %v1447_v41 = vsel %vm777_vm8, %v1445_v60, %v2731_v12 }
 0x189   : > { %v2739_v54 = vpop.permute.xlu1 %2738  ;;  %v2451_v40 = vpack.c.bf16 %v1447_v41, %v1446_v50 }
 0x18a   : > { %v2741_v31 = vunpack.i.h.bf16 %v2739_v54  ;;  %v2740_v17 = vunpack.i.l.bf16 %v2739_v54 }
 0x18b   : > { %2453 = vmatprep.subr.msk.bf16.mxu1 %vm4165_vm11, %v2451_v40 }
 0x18c   : > { %v2243_v33 = vsel %vm777_vm8, %v2241_v13, %v2740_v17  ;;  %v2244_v57 = vsel %vm777_vm8, %v2242_v8, %v2741_v31  ;;  %2456 = vmatpush1.bf16.msk.msra.mxu1 %vm4165_vm11, %v2454_v52 }
 0x18d   : > { %v2463_v26 = vpack.c.bf16 %v2244_v57, %v2243_v33  ;;  %v2749_v34 = vpop.permute.xlu1 %2748 }
 0x18e   : > { %v2751_v6 = vunpack.i.h.bf16 %v2749_v34  ;;  %v2750_v44 = vunpack.i.l.bf16 %v2749_v34 }
 0x18f   : > { %2465 = vmatprep.subr.msk.bf16.mxu0 %vm4165_vm11, %v2463_v26  ;;  %2437 = vmatmul.mubr.msk.f32.vlgmr.msra.gmra.mrb[0].mxu1 %vm1450_vm12, %v2434_v42 }
 0x190   : > { %v2230_v11 = vsel %vm777_vm8, %v2228_v37, %v2751_v6  ;;  %v2229_v36 = vsel %vm777_vm8, %v2227_v27, %v2750_v44 }
 0x191   : > { %v2466_v45 = vpack.c.bf16 %v2230_v11, %v2229_v36 }
 0x193   : > { %2468 = vmatpush1.bf16.msk.msra.mxu0 %vm4165_vm11, %v2466_v45 }
 0x196   : > { %2444 = vmatmul.mubr.msk.f32.vlgmr.msra.gmra.mrb[0].mxu0 %vm1450_vm12, %v2441_v18 }
 0x262   : > { %v1527_v2 = vpop.f32.mrb[0].mxu1 }
 0x263   : > { %v1529_v39 = vpop.f32.mrb[1].mxu1 }
 0x269   : > { %v2322_v22 = vpop.f32.mrb[0].mxu0 }
 0x26a   : > { %v2469_v59 = vadd.f32 %v2322_v22, %v1527_v2  ;;  %v2324_v62 = vpop.f32.mrb[1].mxu0 }
 0x26b   : > { %v2470_v14 = vadd.f32 %v2324_v62, %v1529_v39 }
 0x26c   : > { %2329 = vst [vmem:[%s160_s28] sm:$0xff] %v2469_v59 }
 0x26d   : > { %2330 = vst [vmem:[%s160_s28 + $0x8] sm:$0xff] %v2470_v14 }
 0x26e   : > { %2773 = shalt.err (!%p2770_p5)
}
 0x26f   : > { %s2774_s15 = scalar_lea.hbm %s4302_s4, 256  ;;  %s2778_s20 = scalar_lea.hbm %s4351_s2, 512 }
 0x270   : > { %p2775_p6 = scmp.ne.s32.totalorder %s4302_s4, %s2774_s15  ;;  %p2779_p10 = scmp.lt.u32.totalorder %s4302_s4, %s4351_s2 }
 0x271   : > { %p2780_p11 = scmp.lt.u32.totalorder %s2778_s20, %s2774_s15  ;;  %p2782_p13 = scmp.lt.u32.totalorder %s2774_s15, %s4302_s4 }
 0x272   : > { %p2776_p7 = pnand %p2775_p6, %p2909_p4 }
 0x273   : > { %p2781_p12 = por %p2780_p11, %p2779_p10 }
 0x274   : > { %p2777_p9 = pneg %p2776_p7 }
 0x275   : > { %p2783_p0 = por %p2782_p13, %p2781_p12 }
 0x277   : > { %p2784_p1 = pnand %p2783_p0, %p2777_p9 }
 0x279   : > { %2787 = shalt.err (!%p2784_p1)
}
 0x27a   : > { %2474 = dma.vmem_to_hbm [thread:$0]  (%p2909_p4), %s4304_s29, 256, %s4302_s4, %s2332_s5  }
 0x27b PF: > { %p2480_p2 = scmp.ge.s32.totalorder %s2838_s14, 2  ;;  %s2360_s25 = sand.u32 1, %s2818_s9  }
 0x27c   : > { %s2361_s26 = scalar_lea.sflag [#allocation3], %s2360_s25 }
 0x27d   : > { %p2477_p3 = pnand %p2480_p2, %p2916_p8 }
 0x27f   : > { %2813 = dma.done.wait (!%p2477_p3), %s2361_s26, 256  }
 0x280   : > { %2815 = vsyncadd (!%p2477_p3), %s2361_s26, 4294967040  ;;  %s15_s14 = sadd.s32 1, %s2838_s14   ;;  %s4586_s9 = smov %s2822_s10 }
 0x281   : > { %p12_p5 = scmp.ge.s32.totalorder %s15_s14, 4   ;;  %s4587_s10 = smov %s2826_s11 }
 0x282   : > { %s4588_s11 = smov %s2922_s22  ;;  %s4589_s12 = smov %s2834_s13 }
 0x283   : > { %s4590_s13 = smov %s4592_s17  ;;  %14 = sbr.rel (!%p12_p5) target bundleno = 4 (0x4), region = 65 }
 0x28a   :  { %2366 = vsyncpa [#allocation3], 1 }
 0x28b   :  { %2368 = vsyncpa [#allocation3 + $0x1], 1 }

</bundles_post_ra>
